<compile_context>
chip_gen: v7x
topology: tpu7x:2x2x1
jax: 0.10.0
libtpu: 0.0.40
codegen_flags: <defaults>
</compile_context>

<pallas_src>
import math
from functools import partial

import jax
import jax.numpy as jnp
from jax import lax
from jax.experimental import pallas as pl
from jax.experimental.pallas import tpu as pltpu

_LN_EPS = 1e-5


def _round_up(n, m):
    return ((n + m - 1) // m) * m


def _vmem_limit_bytes():
    """Generation-aware scoped-VMEM request with headroom for Mosaic scratch."""
    try:
        cap = int(getattr(pltpu.get_tpu_info(), "vmem_capacity_bytes"))
    except Exception:
        cap = 128 * 1024 * 1024
    # ~3/4 of physical VMEM: ~48 MiB on v7x (64 MiB), ~96 MiB on v5e/v6e.
    return max(32 * 1024 * 1024, min((cap * 3) // 4, 100 * 1024 * 1024))


def _const_spec(shape, index_map):
    """BlockSpec for weights/biases whose block index never changes.

    Single-buffered so the pipeline does not double their VMEM residency
    (matters most on v7x's 64 MiB VMEM at realistic C).
    """
    try:
        return pl.BlockSpec(shape, index_map, pipeline_mode=pl.Buffered(1))
    except Exception:  # older jax without pipeline_mode kwarg
        return pl.BlockSpec(shape, index_map)


def _layer_norm_f32(x_f32, w_f32, b_f32):
    mu = jnp.mean(x_f32, axis=-1, keepdims=True)
    var = jnp.mean(jnp.square(x_f32 - mu), axis=-1, keepdims=True)
    return (x_f32 - mu) * lax.rsqrt(var + _LN_EPS) * w_f32 + b_f32


def _attn_block_kernel(x_ref, ln_w_ref, ln_b_ref, wqkv_ref, bqkv_ref,
                       wo_ref, bo_ref, o_ref, y_scr, *, n_head, tq):
    """x1[q-tile] = x[q-tile] + c_proj(MHSA(ln_1(x)))[q-tile], non-causal."""
    T, C = x_ref.shape
    hd = C // n_head
    scale = 1.0 / math.sqrt(hd)
    dtype = x_ref.dtype
    single_tile = (tq == T)

    ln_w = ln_w_ref[...].astype(jnp.float32)
    ln_b = ln_b_ref[...].astype(jnp.float32)
    b_qkv = bqkv_ref[...].astype(jnp.float32)                  # (1, 3C)

    # LayerNorm in f32; MXU feeds in the activation's native dtype.
    x_all_f32 = x_ref[...].astype(jnp.float32)                 # (T, C)
    xn_all = _layer_norm_f32(x_all_f32, ln_w, ln_b).astype(dtype)

    if single_tile:
        xq_f32, xn_q = x_all_f32, xn_all
    else:
        q_start = pl.multiple_of(pl.program_id(1) * tq, tq)
        xq_f32 = x_ref[pl.ds(q_start, tq), :].astype(jnp.float32)
        xn_q = _layer_norm_f32(xq_f32, ln_w, ln_b).astype(dtype)

    # Q only for this query tile; K/V over the full sequence.  The 1/sqrt(hd)
    # scale is folded into q so the (tq, T) score matrices are never rescaled.
    q = jnp.dot(xn_q, wqkv_ref[:, 0:C], preferred_element_type=jnp.float32)
    q = ((q + b_qkv[:, 0:C]) * scale).astype(dtype)
    k = jnp.dot(xn_all, wqkv_ref[:, C:2 * C], preferred_element_type=jnp.float32)
    k = (k + b_qkv[:, C:2 * C]).astype(dtype)
    v = jnp.dot(xn_all, wqkv_ref[:, 2 * C:3 * C], preferred_element_type=jnp.float32)
    v = (v + b_qkv[:, 2 * C:3 * C]).astype(dtype)

    # Per-head attention with deferred softmax normalization.  Each head's
    # output is written to a (tq, C) VMEM scratch at a static lane offset so
    # the output projection is a single (tq, C) @ (C, C) matmul (no concat).
    # TODO(synk): KV-tiled online-softmax (flash) accumulation for very long T.
    for h in range(n_head):
        qh = q[:, h * hd:(h + 1) * hd]                          # (tq, hd)
        kh = k[:, h * hd:(h + 1) * hd]                          # (T, hd)
        vh = v[:, h * hd:(h + 1) * hd]                          # (T, hd)
        s = lax.dot_general(qh, kh, (((1,), (1,)), ((), ())),
                            preferred_element_type=jnp.float32)  # (tq, T)
        s = s - jnp.max(s, axis=-1, keepdims=True)
        e = jnp.exp(s)
        denom = jnp.sum(e, axis=-1, keepdims=True)               # (tq, 1)
        yh = jnp.dot(e.astype(dtype), vh, preferred_element_type=jnp.float32)
        yh = yh * pl.reciprocal(denom, approx=True)              # EUP, not VALU divide
        y_scr[:, h * hd:(h + 1) * hd] = yh.astype(y_scr.dtype)

    out = jnp.dot(y_scr[...], wo_ref[...], preferred_element_type=jnp.float32)
    out = out + bo_ref[...].astype(jnp.float32)

    # attn_dropout / resid_dropout are identity at p=0 / eval.
    o_ref[...] = (xq_f32 + out).astype(o_ref.dtype)


def _mlp_block_kernel(x_ref, ln_w_ref, ln_b_ref, wfc_ref, bfc_ref,
                      wpr_ref, bpr_ref, k_ref, v_ref):
    """(k, v) = x + split(c_proj(GELU(c_fc(ln_2(x)))), C) for one row tile."""
    C = k_ref.shape[-1]

    x_f32 = x_ref[...].astype(jnp.float32)
    xn = _layer_norm_f32(x_f32,
                         ln_w_ref[...].astype(jnp.float32),
                         ln_b_ref[...].astype(jnp.float32))
    xn = xn.astype(x_ref.dtype)   # native-dtype MXU feed, f32 accumulation

    h = jnp.dot(xn, wfc_ref[...], preferred_element_type=jnp.float32)
    h = h + bfc_ref[...].astype(jnp.float32)

    # Exact (erf) GELU, matching torch.nn.GELU() default.
    h = 0.5 * h * (1.0 + lax.erf(h * (1.0 / math.sqrt(2.0))))

    o = jnp.dot(h.astype(wpr_ref.dtype), wpr_ref[...],
                preferred_element_type=jnp.float32)
    o = o + bpr_ref[...].astype(jnp.float32)

    # Dropout is identity at p=0 / eval.
    # TODO(synk): training-mode dropout (random mask via pltpu.prng_*) not implemented.
    k_ref[...] = (x_f32 + o[:, :C]).astype(k_ref.dtype)
    v_ref[...] = (x_f32 + o[:, C:2 * C]).astype(v_ref.dtype)


@partial(jax.jit, static_argnames=("n_head", "tm", "tq_max"))
def end_encoder_block_forward(x, params, *, n_head, tm=256, tq_max=512):
    """Pallas forward of EndEncoderBlock.

    x: (B, T, C).  Linear weights are stored (in_features, out_features) so
    matmuls are `rows @ W + b` (equivalent to torch's x @ W.T, W (out, in)).
    Returns (k, v), each (B, T, C).
    """
    B, T, C = x.shape
    assert C % n_head == 0
    dtype = x.dtype
    itemsize = jnp.dtype(dtype).itemsize
    H = params["w_fc"].shape[1]          # 4*C
    vmem_limit = _vmem_limit_bytes()

    # Weights cast once to the activation dtype (halves DMA/VMEM when bf16).
    w_attn = params["w_attn"].astype(dtype)
    w_ao = params["w_attn_proj"].astype(dtype)
    w_fc = params["w_fc"].astype(dtype)
    w_pr = params["w_mlp_proj"].astype(dtype)

    # ---------- stage 1: x1 = x + attn(ln_1(x)), grid = (batch, q-tile) -----
    tq = T
    if T > tq_max:
        for cand in (tq_max, 256, 128):
            if T % cand == 0:
                tq = cand
                break
    n_q = T // tq if T % tq == 0 else 1

    ln1_w = params["ln1_w"].astype(dtype).reshape(1, C)
    ln1_b = params["ln1_b"].astype(dtype).reshape(1, C)
    b_qkv = params["b_attn"].astype(dtype).reshape(1, 3 * C)
    b_ao = params["b_attn_proj"].astype(dtype).reshape(1, C)

    attn_flops = B * (2 * T * C * (3 * C) + 4 * T * T * C + 2 * T * C * C)
    attn_bytes = (2 * x.size + w_attn.size + w_ao.size) * itemsize

    x1 = pl.pallas_call(
        partial(_attn_block_kernel, n_head=n_head, tq=tq),
        out_shape=jax.ShapeDtypeStruct((B, T, C), dtype),
        grid_spec=pltpu.PrefetchScalarGridSpec(
            num_scalar_prefetch=0,
            grid=(B, n_q),
            in_specs=[
                pl.BlockSpec((None, T, C), lambda b, qi: (b, 0, 0)),       # x[b]
                _const_spec((1, C), lambda b, qi: (0, 0)),                 # ln1 w
                _const_spec((1, C), lambda b, qi: (0, 0)),                 # ln1 b
                _const_spec((C, 3 * C), lambda b, qi: (0, 0)),             # W_qkv
                _const_spec((1, 3 * C), lambda b, qi: (0, 0)),             # b_qkv
                _const_spec((C, C), lambda b, qi: (0, 0)),                 # W_attn_proj
                _const_spec((1, C), lambda b, qi: (0, 0)),                 # b_attn_proj
            ],
            out_specs=pl.BlockSpec((None, tq, C), lambda b, qi: (b, qi, 0)),
            scratch_shapes=[pltpu.VMEM((tq, C), dtype)],                   # per-head y
        ),
        compiler_params=pltpu.CompilerParams(
            dimension_semantics=("parallel", "parallel"),
            vmem_limit_bytes=vmem_limit),
        cost_estimate=pl.CostEstimate(
            flops=attn_flops,
            transcendentals=B * n_head * T * T,
            bytes_accessed=attn_bytes),
    )(x, ln1_w, ln1_b, w_attn, b_qkv, w_ao, b_ao)

    # ---------- stage 2: (k, v) = x1 + split(MLP(ln_2(x1))), row-tiled -------
    M = B * T
    rows = x1.reshape(M, C)

    # Large row tiles feed the MXU properly; clamp for small problems and keep
    # the sublane constraint (multiple of 8).  Ragged last block is handled by
    # Pallas (grid = cdiv), so no host-side pad / post-slice.
    tm_eff = _round_up(min(tm, _round_up(M, 8)), 8)
    grid_m = pl.cdiv(M, tm_eff)

    ln2_w = params["ln2_w"].astype(dtype).reshape(1, C)
    ln2_b = params["ln2_b"].astype(dtype).reshape(1, C)
    b_fc = params["b_fc"].astype(dtype).reshape(1, H)
    b_pr = params["b_mlp_proj"].astype(dtype).reshape(1, 2 * C)

    mlp_flops = 2 * M * C * H + 2 * M * H * (2 * C)
    mlp_bytes = (3 * M * C + w_fc.size + w_pr.size) * itemsize

    k_rows, v_rows = pl.pallas_call(
        _mlp_block_kernel,
        out_shape=(jax.ShapeDtypeStruct((M, C), dtype),
                   jax.ShapeDtypeStruct((M, C), dtype)),
        grid_spec=pltpu.PrefetchScalarGridSpec(
            num_scalar_prefetch=0,
            grid=(grid_m,),
            in_specs=[
                pl.BlockSpec((tm_eff, C), lambda i: (i, 0)),               # row tile
                _const_spec((1, C), lambda i: (0, 0)),                     # ln2 w
                _const_spec((1, C), lambda i: (0, 0)),                     # ln2 b
                _const_spec((C, H), lambda i: (0, 0)),                     # W_fc
                _const_spec((1, H), lambda i: (0, 0)),                     # b_fc
                _const_spec((H, 2 * C), lambda i: (0, 0)),                 # W_mlp_proj
                _const_spec((1, 2 * C), lambda i: (0, 0)),                 # b_mlp_proj
            ],
            out_specs=[
                pl.BlockSpec((tm_eff, C), lambda i: (i, 0)),               # k
                pl.BlockSpec((tm_eff, C), lambda i: (i, 0)),               # v
            ],
        ),
        compiler_params=pltpu.CompilerParams(
            dimension_semantics=("parallel",),
            vmem_limit_bytes=vmem_limit),
        cost_estimate=pl.CostEstimate(
            flops=mlp_flops,
            transcendentals=M * H,
            bytes_accessed=mlp_bytes),
    )(rows, ln2_w, ln2_b, w_fc, b_fc, w_pr, b_pr)

    return k_rows.reshape(B, T, C), v_rows.reshape(B, T, C)


def _reference_block(x, params, n_head):
    """Pure-JAX reference mirroring the PyTorch EndEncoderBlock math."""
    def ln(z, w, b):
        mu = jnp.mean(z, axis=-1, keepdims=True)
        var = jnp.mean(jnp.square(z - mu), axis=-1, keepdims=True)
        return (z - mu) / jnp.sqrt(var + _LN_EPS) * w + b

    B, T, C = x.shape
    hd = C // n_head

    xn = ln(x, params["ln1_w"], params["ln1_b"])
    qkv = jnp.einsum("btc,cd->btd", xn, params["w_attn"]) + params["b_attn"]
    q, k, v = jnp.split(qkv, 3, axis=-1)
    q = q.reshape(B, T, n_head, hd).transpose(0, 2, 1, 3)
    k = k.reshape(B, T, n_head, hd).transpose(0, 2, 1, 3)
    v = v.reshape(B, T, n_head, hd).transpose(0, 2, 1, 3)
    att = jnp.einsum("bhqd,bhkd->bhqk", q, k) / math.sqrt(hd)
    att = jax.nn.softmax(att, axis=-1)
    y = jnp.einsum("bhqk,bhkd->bhqd", att, v)
    y = y.transpose(0, 2, 1, 3).reshape(B, T, C)
    y = jnp.einsum("btc,cd->btd", y, params["w_attn_proj"]) + params["b_attn_proj"]
    x1 = x + y

    xn2 = ln(x1, params["ln2_w"], params["ln2_b"])
    h = jnp.einsum("btc,ch->bth", xn2, params["w_fc"]) + params["b_fc"]
    h = 0.5 * h * (1.0 + lax.erf(h / math.sqrt(2.0)))
    o = jnp.einsum("bth,hd->btd", h, params["w_mlp_proj"]) + params["b_mlp_proj"]
    k_out, v_out = jnp.split(o, 2, axis=-1)
    return x1 + k_out, x1 + v_out


if __name__ == "__main__":
    # Toy config: n_embd=32, n_head=4, bias=True, dropout=0.0 (identity).
    B, T, C = 2, 8, 32
    n_head = 4
    H = 4 * C

    key = jax.random.PRNGKey(0)
    keys = jax.random.split(key, 13)

    x = jax.random.normal(keys[0], (B, T, C), dtype=jnp.float32)

    def uinit(k, shape, fan_in):
        lim = 1.0 / math.sqrt(fan_in)
        return jax.random.uniform(k, shape, jnp.float32, -lim, lim)

    params = {
        "ln1_w": 1.0 + 0.1 * jax.random.normal(keys[1], (C,), jnp.float32),
        "ln1_b": 0.1 * jax.random.normal(keys[2], (C,), jnp.float32),
        "w_attn": uinit(keys[3], (C, 3 * C), C),
        "b_attn": uinit(keys[4], (3 * C,), C),
        "w_attn_proj": uinit(keys[5], (C, C), C),
        "b_attn_proj": uinit(keys[6], (C,), C),
        "ln2_w": 1.0 + 0.1 * jax.random.normal(keys[7], (C,), jnp.float32),
        "ln2_b": 0.1 * jax.random.normal(keys[8], (C,), jnp.float32),
        "w_fc": uinit(keys[9], (C, H), C),
        "b_fc": uinit(keys[10], (H,), C),
        "w_mlp_proj": uinit(keys[11], (H, 2 * C), H),
        "b_mlp_proj": uinit(keys[12], (2 * C,), H),
    }

    k_out, v_out = end_encoder_block_forward(x, params, n_head=n_head)
    k_out, v_out = jax.block_until_ready((k_out, v_out))

    k_ref, v_ref = _reference_block(x, params, n_head)
    assert k_out.shape == (B, T, C) and v_out.shape == (B, T, C)
    # Slightly relaxed tolerance: pl.reciprocal(approx=True) in the softmax
    # denominator introduces ~1e-3-level relative error.
    assert jnp.allclose(k_out, k_ref, atol=2e-3, rtol=2e-3), "k mismatch vs reference"
    assert jnp.allclose(v_out, v_ref, atol=2e-3, rtol=2e-3), "v mismatch vs reference"

    print("KERNEL_OK")
</pallas_src>

<mosaic_0001>
module attributes {stable_mosaic.version = 11 : i64} {
  func.func @_mlp_block_kernel(%arg0: i32, %arg1: memref<16x32xf32, #tpu.memory_space<vmem>>, %arg2: memref<1x32xf32, #tpu.memory_space<vmem>>, %arg3: memref<1x32xf32, #tpu.memory_space<vmem>>, %arg4: memref<32x128xf32, #tpu.memory_space<vmem>>, %arg5: memref<1x128xf32, #tpu.memory_space<vmem>>, %arg6: memref<128x64xf32, #tpu.memory_space<vmem>>, %arg7: memref<1x64xf32, #tpu.memory_space<vmem>>, %arg8: memref<16x32xf32, #tpu.memory_space<vmem>>, %arg9: memref<16x32xf32, #tpu.memory_space<vmem>>) attributes {dimension_semantics = [#tpu.dimension_semantics<parallel>], iteration_bounds = array<i64: 1>, scalar_prefetch = 0 : i64, scratch_operands = 0 : i64, tpu.core_type = #tpu.core_type<tc>, window_params = [{transform_indices = @transform_0, window_bounds = array<i64: 16, 32>}, {pipeline_mode = #tpu.pipeline_mode<synchronous>, transform_indices = @transform_1, window_bounds = array<i64: 1, 32>}, {pipeline_mode = #tpu.pipeline_mode<synchronous>, transform_indices = @transform_2, window_bounds = array<i64: 1, 32>}, {pipeline_mode = #tpu.pipeline_mode<synchronous>, transform_indices = @transform_3, window_bounds = array<i64: 32, 128>}, {pipeline_mode = #tpu.pipeline_mode<synchronous>, transform_indices = @transform_4, window_bounds = array<i64: 1, 128>}, {pipeline_mode = #tpu.pipeline_mode<synchronous>, transform_indices = @transform_5, window_bounds = array<i64: 128, 64>}, {pipeline_mode = #tpu.pipeline_mode<synchronous>, transform_indices = @transform_6, window_bounds = array<i64: 1, 64>}, {transform_indices = @transform_7, window_bounds = array<i64: 16, 32>}, {transform_indices = @transform_8, window_bounds = array<i64: 16, 32>}]} {
    %c0 = arith.constant 0 : index
    %c0_0 = arith.constant 0 : index
    %0 = vector.load %arg1[%c0, %c0_0] : memref<16x32xf32, #tpu.memory_space<vmem>>, vector<16x32xf32>
    %c0_1 = arith.constant 0 : index
    %c0_2 = arith.constant 0 : index
    %1 = vector.load %arg2[%c0_1, %c0_2] : memref<1x32xf32, #tpu.memory_space<vmem>>, vector<1x32xf32>
    %c0_3 = arith.constant 0 : index
    %c0_4 = arith.constant 0 : index
    %2 = vector.load %arg3[%c0_3, %c0_4] : memref<1x32xf32, #tpu.memory_space<vmem>>, vector<1x32xf32>
    %cst = arith.constant dense<0.000000e+00> : vector<16xf32>
    %3 = vector.multi_reduction <add>, %0, %cst [1] : vector<16x32xf32> to vector<16xf32>
    %4 = vector.shape_cast %3 : vector<16xf32> to vector<16x1xf32>
    %cst_5 = arith.constant 3.200000e+01 : f32
    %5 = vector.broadcast %cst_5 : f32 to vector<16x1xf32>
    %6 = arith.divf %4, %5 : vector<16x1xf32>
    %7 = vector.broadcast %6 : vector<16x1xf32> to vector<16x32xf32>
    %8 = arith.subf %0, %7 : vector<16x32xf32>
    %9 = arith.mulf %8, %8 : vector<16x32xf32>
    %cst_6 = arith.constant dense<0.000000e+00> : vector<16xf32>
    %10 = vector.multi_reduction <add>, %9, %cst_6 [1] : vector<16x32xf32> to vector<16xf32>
    %11 = vector.shape_cast %10 : vector<16xf32> to vector<16x1xf32>
    %cst_7 = arith.constant 3.200000e+01 : f32
    %12 = vector.broadcast %cst_7 : f32 to vector<16x1xf32>
    %13 = arith.divf %11, %12 : vector<16x1xf32>
    %14 = vector.broadcast %6 : vector<16x1xf32> to vector<16x32xf32>
    %15 = arith.subf %0, %14 : vector<16x32xf32>
    %cst_8 = arith.constant 9.99999974E-6 : f32
    %16 = vector.broadcast %cst_8 : f32 to vector<16x1xf32>
    %17 = arith.addf %13, %16 : vector<16x1xf32>
    %18 = math.rsqrt %17 : vector<16x1xf32>
    %19 = vector.broadcast %18 : vector<16x1xf32> to vector<16x32xf32>
    %20 = arith.mulf %15, %19 : vector<16x32xf32>
    %21 = vector.broadcast %1 : vector<1x32xf32> to vector<16x32xf32>
    %22 = arith.mulf %20, %21 : vector<16x32xf32>
    %23 = vector.broadcast %2 : vector<1x32xf32> to vector<16x32xf32>
    %24 = arith.addf %22, %23 : vector<16x32xf32>
    %c0_9 = arith.constant 0 : index
    %c0_10 = arith.constant 0 : index
    %25 = vector.load %arg4[%c0_9, %c0_10] : memref<32x128xf32, #tpu.memory_space<vmem>>, vector<32x128xf32>
    %cst_11 = arith.constant dense<0.000000e+00> : vector<16x128xf32>
    %26 = tpu.matmul %24, %25, %cst_11 {dimension_numbers = #tpu.dot_dimension_numbers<[1], [0], [0], [1], [0, 0, 1, 1], [], []>} : vector<16x32xf32>, vector<32x128xf32>, vector<16x128xf32> -> vector<16x128xf32>
    %c0_12 = arith.constant 0 : index
    %c0_13 = arith.constant 0 : index
    %27 = vector.load %arg5[%c0_12, %c0_13] : memref<1x128xf32, #tpu.memory_space<vmem>>, vector<1x128xf32>
    %28 = vector.broadcast %27 : vector<1x128xf32> to vector<16x128xf32>
    %29 = arith.addf %26, %28 : vector<16x128xf32>
    %cst_14 = arith.constant 5.000000e-01 : f32
    %30 = vector.broadcast %cst_14 : f32 to vector<16x128xf32>
    %31 = arith.mulf %30, %29 : vector<16x128xf32>
    %cst_15 = arith.constant 0.707106769 : f32
    %32 = vector.broadcast %cst_15 : f32 to vector<16x128xf32>
    %33 = arith.mulf %29, %32 : vector<16x128xf32>
    %34 = math.erf %33 : vector<16x128xf32>
    %cst_16 = arith.constant 1.000000e+00 : f32
    %35 = vector.broadcast %cst_16 : f32 to vector<16x128xf32>
    %36 = arith.addf %35, %34 : vector<16x128xf32>
    %37 = arith.mulf %31, %36 : vector<16x128xf32>
    %c0_17 = arith.constant 0 : index
    %c0_18 = arith.constant 0 : index
    %38 = vector.load %arg6[%c0_17, %c0_18] : memref<128x64xf32, #tpu.memory_space<vmem>>, vector<128x64xf32>
    %cst_19 = arith.constant dense<0.000000e+00> : vector<16x64xf32>
    %39 = tpu.matmul %37, %38, %cst_19 {dimension_numbers = #tpu.dot_dimension_numbers<[1], [0], [0], [1], [0, 0, 1, 1], [], []>} : vector<16x128xf32>, vector<128x64xf32>, vector<16x64xf32> -> vector<16x64xf32>
    %c0_20 = arith.constant 0 : index
    %c0_21 = arith.constant 0 : index
    %40 = vector.load %arg7[%c0_20, %c0_21] : memref<1x64xf32, #tpu.memory_space<vmem>>, vector<1x64xf32>
    %41 = vector.broadcast %40 : vector<1x64xf32> to vector<16x64xf32>
    %42 = arith.addf %39, %41 : vector<16x64xf32>
    %43 = vector.extract_strided_slice %42 {offsets = [0, 0], sizes = [16, 32], strides = [1, 1]} : vector<16x64xf32> to vector<16x32xf32>
    %44 = arith.addf %0, %43 : vector<16x32xf32>
    %c0_22 = arith.constant 0 : index
    %c0_23 = arith.constant 0 : index
    %45 = vector.load %arg8[%c0_22, %c0_23] : memref<16x32xf32, #tpu.memory_space<vmem>>, vector<16x32xf32>
    tpu.vector_store %arg8[%c0_22, %c0_23], %44 {strides = array<i32>} : memref<16x32xf32, #tpu.memory_space<vmem>>, vector<16x32xf32>,
    %46 = vector.extract_strided_slice %42 {offsets = [0, 32], sizes = [16, 32], strides = [1, 1]} : vector<16x64xf32> to vector<16x32xf32>
    %47 = arith.addf %0, %46 : vector<16x32xf32>
    %c0_24 = arith.constant 0 : index
    %c0_25 = arith.constant 0 : index
    %48 = vector.load %arg9[%c0_24, %c0_25] : memref<16x32xf32, #tpu.memory_space<vmem>>, vector<16x32xf32>
    tpu.vector_store %arg9[%c0_24, %c0_25], %47 {strides = array<i32>} : memref<16x32xf32, #tpu.memory_space<vmem>>, vector<16x32xf32>,
    return
  }
  func.func @transform_0(%arg0: i32) -> (i32, i32) {
    %c0_i32 = arith.constant 0 : i32
    %c0_i32_0 = arith.constant 0 : i32
    return %arg0, %c0_i32 : i32, i32
  }
  func.func @transform_1(%arg0: i32) -> (i32, i32) {
    %c0_i32 = arith.constant 0 : i32
    %c0_i32_0 = arith.constant 0 : i32
    %c0_i32_1 = arith.constant 0 : i32
    return %c0_i32, %c0_i32_0 : i32, i32
  }
  func.func @transform_2(%arg0: i32) -> (i32, i32) {
    %c0_i32 = arith.constant 0 : i32
    %c0_i32_0 = arith.constant 0 : i32
    %c0_i32_1 = arith.constant 0 : i32
    return %c0_i32, %c0_i32_0 : i32, i32
  }
  func.func @transform_3(%arg0: i32) -> (i32, i32) {
    %c0_i32 = arith.constant 0 : i32
    %c0_i32_0 = arith.constant 0 : i32
    %c0_i32_1 = arith.constant 0 : i32
    return %c0_i32, %c0_i32_0 : i32, i32
  }
  func.func @transform_4(%arg0: i32) -> (i32, i32) {
    %c0_i32 = arith.constant 0 : i32
    %c0_i32_0 = arith.constant 0 : i32
    %c0_i32_1 = arith.constant 0 : i32
    return %c0_i32, %c0_i32_0 : i32, i32
  }
  func.func @transform_5(%arg0: i32) -> (i32, i32) {
    %c0_i32 = arith.constant 0 : i32
    %c0_i32_0 = arith.constant 0 : i32
    %c0_i32_1 = arith.constant 0 : i32
    return %c0_i32, %c0_i32_0 : i32, i32
  }
  func.func @transform_6(%arg0: i32) -> (i32, i32) {
    %c0_i32 = arith.constant 0 : i32
    %c0_i32_0 = arith.constant 0 : i32
    %c0_i32_1 = arith.constant 0 : i32
    return %c0_i32, %c0_i32_0 : i32, i32
  }
  func.func @transform_7(%arg0: i32) -> (i32, i32) {
    %c0_i32 = arith.constant 0 : i32
    %c0_i32_0 = arith.constant 0 : i32
    return %arg0, %c0_i32 : i32, i32
  }
  func.func @transform_8(%arg0: i32) -> (i32, i32) {
    %c0_i32 = arith.constant 0 : i32
    %c0_i32_0 = arith.constant 0 : i32
    return %arg0, %c0_i32 : i32, i32
  }
}

module attributes {stable_mosaic.version = 11 : i64} {
  func.func @_attn_block_kernel(%arg0: i32, %arg1: i32, %arg2: memref<1x8x32xf32, #tpu.memory_space<vmem>>, %arg3: memref<1x32xf32, #tpu.memory_space<vmem>>, %arg4: memref<1x32xf32, #tpu.memory_space<vmem>>, %arg5: memref<32x96xf32, #tpu.memory_space<vmem>>, %arg6: memref<1x96xf32, #tpu.memory_space<vmem>>, %arg7: memref<32x32xf32, #tpu.memory_space<vmem>>, %arg8: memref<1x32xf32, #tpu.memory_space<vmem>>, %arg9: memref<1x8x32xf32, #tpu.memory_space<vmem>>, %arg10: memref<8x32xf32, #tpu.memory_space<vmem>>) attributes {dimension_semantics = [#tpu.dimension_semantics<parallel>, #tpu.dimension_semantics<parallel>], iteration_bounds = array<i64: 2, 1>, scalar_prefetch = 0 : i64, scratch_operands = 1 : i64, tpu.core_type = #tpu.core_type<tc>, window_params = [{transform_indices = @transform_0, window_bounds = array<i64: 1, 8, 32>}, {pipeline_mode = #tpu.pipeline_mode<synchronous>, transform_indices = @transform_1, window_bounds = array<i64: 1, 32>}, {pipeline_mode = #tpu.pipeline_mode<synchronous>, transform_indices = @transform_2, window_bounds = array<i64: 1, 32>}, {pipeline_mode = #tpu.pipeline_mode<synchronous>, transform_indices = @transform_3, window_bounds = array<i64: 32, 96>}, {pipeline_mode = #tpu.pipeline_mode<synchronous>, transform_indices = @transform_4, window_bounds = array<i64: 1, 96>}, {pipeline_mode = #tpu.pipeline_mode<synchronous>, transform_indices = @transform_5, window_bounds = array<i64: 32, 32>}, {pipeline_mode = #tpu.pipeline_mode<synchronous>, transform_indices = @transform_6, window_bounds = array<i64: 1, 32>}, {transform_indices = @transform_7, window_bounds = array<i64: 1, 8, 32>}]} {
    %c0 = arith.constant 0 : index
    %c0_0 = arith.constant 0 : index
    %0 = vector.load %arg3[%c0, %c0_0] : memref<1x32xf32, #tpu.memory_space<vmem>>, vector<1x32xf32>
    %c0_1 = arith.constant 0 : index
    %c0_2 = arith.constant 0 : index
    %1 = vector.load %arg4[%c0_1, %c0_2] : memref<1x32xf32, #tpu.memory_space<vmem>>, vector<1x32xf32>
    %c0_3 = arith.constant 0 : index
    %c0_4 = arith.constant 0 : index
    %2 = vector.load %arg6[%c0_3, %c0_4] : memref<1x96xf32, #tpu.memory_space<vmem>>, vector<1x96xf32>
    %c0_5 = arith.constant 0 : index
    %c0_6 = arith.constant 0 : index
    %c0_7 = arith.constant 0 : index
    %3 = vector.load %arg2[%c0_5, %c0_6, %c0_7] : memref<1x8x32xf32, #tpu.memory_space<vmem>>, vector<1x8x32xf32>
    %4 = vector.shape_cast %3 : vector<1x8x32xf32> to vector<8x32xf32>
    %cst = arith.constant dense<0.000000e+00> : vector<8xf32>
    %5 = vector.multi_reduction <add>, %4, %cst [1] : vector<8x32xf32> to vector<8xf32>
    %6 = vector.shape_cast %5 : vector<8xf32> to vector<8x1xf32>
    %cst_8 = arith.constant 3.200000e+01 : f32
    %7 = vector.broadcast %cst_8 : f32 to vector<8x1xf32>
    %8 = arith.divf %6, %7 : vector<8x1xf32>
    %9 = vector.broadcast %8 : vector<8x1xf32> to vector<8x32xf32>
    %10 = arith.subf %4, %9 : vector<8x32xf32>
    %11 = arith.mulf %10, %10 : vector<8x32xf32>
    %cst_9 = arith.constant dense<0.000000e+00> : vector<8xf32>
    %12 = vector.multi_reduction <add>, %11, %cst_9 [1] : vector<8x32xf32> to vector<8xf32>
    %13 = vector.shape_cast %12 : vector<8xf32> to vector<8x1xf32>
    %cst_10 = arith.constant 3.200000e+01 : f32
    %14 = vector.broadcast %cst_10 : f32 to vector<8x1xf32>
    %15 = arith.divf %13, %14 : vector<8x1xf32>
    %16 = vector.broadcast %8 : vector<8x1xf32> to vector<8x32xf32>
    %17 = arith.subf %4, %16 : vector<8x32xf32>
    %cst_11 = arith.constant 9.99999974E-6 : f32
    %18 = vector.broadcast %cst_11 : f32 to vector<8x1xf32>
    %19 = arith.addf %15, %18 : vector<8x1xf32>
    %20 = math.rsqrt %19 : vector<8x1xf32>
    %21 = vector.broadcast %20 : vector<8x1xf32> to vector<8x32xf32>
    %22 = arith.mulf %17, %21 : vector<8x32xf32>
    %23 = vector.broadcast %0 : vector<1x32xf32> to vector<8x32xf32>
    %24 = arith.mulf %22, %23 : vector<8x32xf32>
    %25 = vector.broadcast %1 : vector<1x32xf32> to vector<8x32xf32>
    %26 = arith.addf %24, %25 : vector<8x32xf32>
    %c0_12 = arith.constant 0 : index
    %c0_13 = arith.constant 0 : index
    %27 = vector.load %arg5[%c0_12, %c0_13] : memref<32x96xf32, #tpu.memory_space<vmem>>, vector<32x32xf32>
    %cst_14 = arith.constant dense<0.000000e+00> : vector<8x32xf32>
    %28 = tpu.matmul %26, %27, %cst_14 {dimension_numbers = #tpu.dot_dimension_numbers<[1], [0], [0], [1], [0, 0, 1, 1], [], []>} : vector<8x32xf32>, vector<32x32xf32>, vector<8x32xf32> -> vector<8x32xf32>
    %29 = vector.extract_strided_slice %2 {offsets = [0, 0], sizes = [1, 32], strides = [1, 1]} : vector<1x96xf32> to vector<1x32xf32>
    %30 = vector.broadcast %29 : vector<1x32xf32> to vector<8x32xf32>
    %31 = arith.addf %28, %30 : vector<8x32xf32>
    %cst_15 = arith.constant 0.353553385 : f32
    %32 = vector.broadcast %cst_15 : f32 to vector<8x32xf32>
    %33 = arith.mulf %31, %32 : vector<8x32xf32>
    %c0_16 = arith.constant 0 : index
    %c32 = arith.constant 32 : index
    %34 = vector.load %arg5[%c0_16, %c32] : memref<32x96xf32, #tpu.memory_space<vmem>>, vector<32x32xf32>
    %cst_17 = arith.constant dense<0.000000e+00> : vector<8x32xf32>
    %35 = tpu.matmul %26, %34, %cst_17 {dimension_numbers = #tpu.dot_dimension_numbers<[1], [0], [0], [1], [0, 0, 1, 1], [], []>} : vector<8x32xf32>, vector<32x32xf32>, vector<8x32xf32> -> vector<8x32xf32>
    %36 = vector.extract_strided_slice %2 {offsets = [0, 32], sizes = [1, 32], strides = [1, 1]} : vector<1x96xf32> to vector<1x32xf32>
    %37 = vector.broadcast %36 : vector<1x32xf32> to vector<8x32xf32>
    %38 = arith.addf %35, %37 : vector<8x32xf32>
    %c0_18 = arith.constant 0 : index
    %c64 = arith.constant 64 : index
    %39 = vector.load %arg5[%c0_18, %c64] : memref<32x96xf32, #tpu.memory_space<vmem>>, vector<32x32xf32>
    %cst_19 = arith.constant dense<0.000000e+00> : vector<8x32xf32>
    %40 = tpu.matmul %26, %39, %cst_19 {dimension_numbers = #tpu.dot_dimension_numbers<[1], [0], [0], [1], [0, 0, 1, 1], [], []>} : vector<8x32xf32>, vector<32x32xf32>, vector<8x32xf32> -> vector<8x32xf32>
    %41 = vector.extract_strided_slice %2 {offsets = [0, 64], sizes = [1, 32], strides = [1, 1]} : vector<1x96xf32> to vector<1x32xf32>
    %42 = vector.broadcast %41 : vector<1x32xf32> to vector<8x32xf32>
    %43 = arith.addf %40, %42 : vector<8x32xf32>
    %44 = vector.extract_strided_slice %33 {offsets = [0, 0], sizes = [8, 8], strides = [1, 1]} : vector<8x32xf32> to vector<8x8xf32>
    %45 = vector.extract_strided_slice %38 {offsets = [0, 0], sizes = [8, 8], strides = [1, 1]} : vector<8x32xf32> to vector<8x8xf32>
    %46 = vector.extract_strided_slice %43 {offsets = [0, 0], sizes = [8, 8], strides = [1, 1]} : vector<8x32xf32> to vector<8x8xf32>
    %cst_20 = arith.constant dense<0.000000e+00> : vector<8x8xf32>
    %47 = tpu.matmul %44, %45, %cst_20 {dimension_numbers = #tpu.dot_dimension_numbers<[1], [1], [0], [0], [0, 0, 1, 0], [], []>} : vector<8x8xf32>, vector<8x8xf32>, vector<8x8xf32> -> vector<8x8xf32>
    %cst_21 = arith.constant dense<0xFF800000> : vector<8xf32>
    %48 = vector.multi_reduction <maximumf>, %47, %cst_21 [1] : vector<8x8xf32> to vector<8xf32>
    %49 = vector.shape_cast %48 : vector<8xf32> to vector<8x1xf32>
    %50 = vector.broadcast %49 : vector<8x1xf32> to vector<8x8xf32>
    %51 = arith.subf %47, %50 : vector<8x8xf32>
    %52 = math.exp %51 : vector<8x8xf32>
    %cst_22 = arith.constant dense<0.000000e+00> : vector<8xf32>
    %53 = vector.multi_reduction <add>, %52, %cst_22 [1] : vector<8x8xf32> to vector<8xf32>
    %54 = vector.shape_cast %53 : vector<8xf32> to vector<8x1xf32>
    %cst_23 = arith.constant dense<0.000000e+00> : vector<8x8xf32>
    %55 = tpu.matmul %52, %46, %cst_23 {dimension_numbers = #tpu.dot_dimension_numbers<[1], [0], [0], [1], [0, 0, 1, 1], [], []>} : vector<8x8xf32>, vector<8x8xf32>, vector<8x8xf32> -> vector<8x8xf32>
    %56 = tpu.reciprocal %54 {approx = true} : vector<8x1xf32> -> vector<8x1xf32>
    %57 = vector.broadcast %56 : vector<8x1xf32> to vector<8x8xf32>
    %58 = arith.mulf %55, %57 : vector<8x8xf32>
    %c0_24 = arith.constant 0 : index
    %c0_25 = arith.constant 0 : index
    %59 = vector.load %arg10[%c0_24, %c0_25] : memref<8x32xf32, #tpu.memory_space<vmem>>, vector<8x8xf32>
    tpu.vector_store %arg10[%c0_24, %c0_25], %58 {strides = array<i32>} : memref<8x32xf32, #tpu.memory_space<vmem>>, vector<8x8xf32>,
    %60 = vector.extract_strided_slice %33 {offsets = [0, 8], sizes = [8, 8], strides = [1, 1]} : vector<8x32xf32> to vector<8x8xf32>
    %61 = vector.extract_strided_slice %38 {offsets = [0, 8], sizes = [8, 8], strides = [1, 1]} : vector<8x32xf32> to vector<8x8xf32>
    %62 = vector.extract_strided_slice %43 {offsets = [0, 8], sizes = [8, 8], strides = [1, 1]} : vector<8x32xf32> to vector<8x8xf32>
    %cst_26 = arith.constant dense<0.000000e+00> : vector<8x8xf32>
    %63 = tpu.matmul %60, %61, %cst_26 {dimension_numbers = #tpu.dot_dimension_numbers<[1], [1], [0], [0], [0, 0, 1, 0], [], []>} : vector<8x8xf32>, vector<8x8xf32>, vector<8x8xf32> -> vector<8x8xf32>
    %cst_27 = arith.constant dense<0xFF800000> : vector<8xf32>
    %64 = vector.multi_reduction <maximumf>, %63, %cst_27 [1] : vector<8x8xf32> to vector<8xf32>
    %65 = vector.shape_cast %64 : vector<8xf32> to vector<8x1xf32>
    %66 = vector.broadcast %65 : vector<8x1xf32> to vector<8x8xf32>
    %67 = arith.subf %63, %66 : vector<8x8xf32>
    %68 = math.exp %67 : vector<8x8xf32>
    %cst_28 = arith.constant dense<0.000000e+00> : vector<8xf32>
    %69 = vector.multi_reduction <add>, %68, %cst_28 [1] : vector<8x8xf32> to vector<8xf32>
    %70 = vector.shape_cast %69 : vector<8xf32> to vector<8x1xf32>
    %cst_29 = arith.constant dense<0.000000e+00> : vector<8x8xf32>
    %71 = tpu.matmul %68, %62, %cst_29 {dimension_numbers = #tpu.dot_dimension_numbers<[1], [0], [0], [1], [0, 0, 1, 1], [], []>} : vector<8x8xf32>, vector<8x8xf32>, vector<8x8xf32> -> vector<8x8xf32>
    %72 = tpu.reciprocal %70 {approx = true} : vector<8x1xf32> -> vector<8x1xf32>
    %73 = vector.broadcast %72 : vector<8x1xf32> to vector<8x8xf32>
    %74 = arith.mulf %71, %73 : vector<8x8xf32>
    %c0_30 = arith.constant 0 : index
    %c8 = arith.constant 8 : index
    %75 = vector.load %arg10[%c0_30, %c8] : memref<8x32xf32, #tpu.memory_space<vmem>>, vector<8x8xf32>
    tpu.vector_store %arg10[%c0_30, %c8], %74 {strides = array<i32>} : memref<8x32xf32, #tpu.memory_space<vmem>>, vector<8x8xf32>,
    %76 = vector.extract_strided_slice %33 {offsets = [0, 16], sizes = [8, 8], strides = [1, 1]} : vector<8x32xf32> to vector<8x8xf32>
    %77 = vector.extract_strided_slice %38 {offsets = [0, 16], sizes = [8, 8], strides = [1, 1]} : vector<8x32xf32> to vector<8x8xf32>
    %78 = vector.extract_strided_slice %43 {offsets = [0, 16], sizes = [8, 8], strides = [1, 1]} : vector<8x32xf32> to vector<8x8xf32>
    %cst_31 = arith.constant dense<0.000000e+00> : vector<8x8xf32>
    %79 = tpu.matmul %76, %77, %cst_31 {dimension_numbers = #tpu.dot_dimension_numbers<[1], [1], [0], [0], [0, 0, 1, 0], [], []>} : vector<8x8xf32>, vector<8x8xf32>, vector<8x8xf32> -> vector<8x8xf32>
    %cst_32 = arith.constant dense<0xFF800000> : vector<8xf32>
    %80 = vector.multi_reduction <maximumf>, %79, %cst_32 [1] : vector<8x8xf32> to vector<8xf32>
    %81 = vector.shape_cast %80 : vector<8xf32> to vector<8x1xf32>
    %82 = vector.broadcast %81 : vector<8x1xf32> to vector<8x8xf32>
    %83 = arith.subf %79, %82 : vector<8x8xf32>
    %84 = math.exp %83 : vector<8x8xf32>
    %cst_33 = arith.constant dense<0.000000e+00> : vector<8xf32>
    %85 = vector.multi_reduction <add>, %84, %cst_33 [1] : vector<8x8xf32> to vector<8xf32>
    %86 = vector.shape_cast %85 : vector<8xf32> to vector<8x1xf32>
    %cst_34 = arith.constant dense<0.000000e+00> : vector<8x8xf32>
    %87 = tpu.matmul %84, %78, %cst_34 {dimension_numbers = #tpu.dot_dimension_numbers<[1], [0], [0], [1], [0, 0, 1, 1], [], []>} : vector<8x8xf32>, vector<8x8xf32>, vector<8x8xf32> -> vector<8x8xf32>
    %88 = tpu.reciprocal %86 {approx = true} : vector<8x1xf32> -> vector<8x1xf32>
    %89 = vector.broadcast %88 : vector<8x1xf32> to vector<8x8xf32>
    %90 = arith.mulf %87, %89 : vector<8x8xf32>
    %c0_35 = arith.constant 0 : index
    %c16 = arith.constant 16 : index
    %91 = vector.load %arg10[%c0_35, %c16] : memref<8x32xf32, #tpu.memory_space<vmem>>, vector<8x8xf32>
    tpu.vector_store %arg10[%c0_35, %c16], %90 {strides = array<i32>} : memref<8x32xf32, #tpu.memory_space<vmem>>, vector<8x8xf32>,
    %92 = vector.extract_strided_slice %33 {offsets = [0, 24], sizes = [8, 8], strides = [1, 1]} : vector<8x32xf32> to vector<8x8xf32>
    %93 = vector.extract_strided_slice %38 {offsets = [0, 24], sizes = [8, 8], strides = [1, 1]} : vector<8x32xf32> to vector<8x8xf32>
    %94 = vector.extract_strided_slice %43 {offsets = [0, 24], sizes = [8, 8], strides = [1, 1]} : vector<8x32xf32> to vector<8x8xf32>
    %cst_36 = arith.constant dense<0.000000e+00> : vector<8x8xf32>
    %95 = tpu.matmul %92, %93, %cst_36 {dimension_numbers = #tpu.dot_dimension_numbers<[1], [1], [0], [0], [0, 0, 1, 0], [], []>} : vector<8x8xf32>, vector<8x8xf32>, vector<8x8xf32> -> vector<8x8xf32>
    %cst_37 = arith.constant dense<0xFF800000> : vector<8xf32>
    %96 = vector.multi_reduction <maximumf>, %95, %cst_37 [1] : vector<8x8xf32> to vector<8xf32>
    %97 = vector.shape_cast %96 : vector<8xf32> to vector<8x1xf32>
    %98 = vector.broadcast %97 : vector<8x1xf32> to vector<8x8xf32>
    %99 = arith.subf %95, %98 : vector<8x8xf32>
    %100 = math.exp %99 : vector<8x8xf32>
    %cst_38 = arith.constant dense<0.000000e+00> : vector<8xf32>
    %101 = vector.multi_reduction <add>, %100, %cst_38 [1] : vector<8x8xf32> to vector<8xf32>
    %102 = vector.shape_cast %101 : vector<8xf32> to vector<8x1xf32>
    %cst_39 = arith.constant dense<0.000000e+00> : vector<8x8xf32>
    %103 = tpu.matmul %100, %94, %cst_39 {dimension_numbers = #tpu.dot_dimension_numbers<[1], [0], [0], [1], [0, 0, 1, 1], [], []>} : vector<8x8xf32>, vector<8x8xf32>, vector<8x8xf32> -> vector<8x8xf32>
    %104 = tpu.reciprocal %102 {approx = true} : vector<8x1xf32> -> vector<8x1xf32>
    %105 = vector.broadcast %104 : vector<8x1xf32> to vector<8x8xf32>
    %106 = arith.mulf %103, %105 : vector<8x8xf32>
    %c0_40 = arith.constant 0 : index
    %c24 = arith.constant 24 : index
    %107 = vector.load %arg10[%c0_40, %c24] : memref<8x32xf32, #tpu.memory_space<vmem>>, vector<8x8xf32>
    tpu.vector_store %arg10[%c0_40, %c24], %106 {strides = array<i32>} : memref<8x32xf32, #tpu.memory_space<vmem>>, vector<8x8xf32>,
    %c0_41 = arith.constant 0 : index
    %c0_42 = arith.constant 0 : index
    %108 = vector.load %arg10[%c0_41, %c0_42] : memref<8x32xf32, #tpu.memory_space<vmem>>, vector<8x32xf32>
    %c0_43 = arith.constant 0 : index
    %c0_44 = arith.constant 0 : index
    %109 = vector.load %arg7[%c0_43, %c0_44] : memref<32x32xf32, #tpu.memory_space<vmem>>, vector<32x32xf32>
    %cst_45 = arith.constant dense<0.000000e+00> : vector<8x32xf32>
    %110 = tpu.matmul %108, %109, %cst_45 {dimension_numbers = #tpu.dot_dimension_numbers<[1], [0], [0], [1], [0, 0, 1, 1], [], []>} : vector<8x32xf32>, vector<32x32xf32>, vector<8x32xf32> -> vector<8x32xf32>
    %c0_46 = arith.constant 0 : index
    %c0_47 = arith.constant 0 : index
    %111 = vector.load %arg8[%c0_46, %c0_47] : memref<1x32xf32, #tpu.memory_space<vmem>>, vector<1x32xf32>
    %112 = vector.broadcast %111 : vector<1x32xf32> to vector<8x32xf32>
    %113 = arith.addf %110, %112 : vector<8x32xf32>
    %114 = arith.addf %4, %113 : vector<8x32xf32>
    %c0_48 = arith.constant 0 : index
    %c0_49 = arith.constant 0 : index
    %c0_50 = arith.constant 0 : index
    %115 = vector.load %arg9[%c0_48, %c0_49, %c0_50] : memref<1x8x32xf32, #tpu.memory_space<vmem>>, vector<1x8x32xf32>
    %116 = vector.shape_cast %115 : vector<1x8x32xf32> to vector<8x32xf32>
    %117 = vector.shape_cast %114 : vector<8x32xf32> to vector<1x8x32xf32>
    tpu.vector_store %arg9[%c0_48, %c0_49, %c0_50], %117 {strides = array<i32>} : memref<1x8x32xf32, #tpu.memory_space<vmem>>, vector<1x8x32xf32>,
    return
  }
  func.func @transform_0(%arg0: i32, %arg1: i32) -> (i32, i32, i32) {
    %c0_i32 = arith.constant 0 : i32
    %c0_i32_0 = arith.constant 0 : i32
    %c0_i32_1 = arith.constant 0 : i32
    return %arg0, %c0_i32, %c0_i32_0 : i32, i32, i32
  }
  func.func @transform_1(%arg0: i32, %arg1: i32) -> (i32, i32) {
    %c0_i32 = arith.constant 0 : i32
    %c0_i32_0 = arith.constant 0 : i32
    %c0_i32_1 = arith.constant 0 : i32
    return %c0_i32, %c0_i32_0 : i32, i32
  }
  func.func @transform_2(%arg0: i32, %arg1: i32) -> (i32, i32) {
    %c0_i32 = arith.constant 0 : i32
    %c0_i32_0 = arith.constant 0 : i32
    %c0_i32_1 = arith.constant 0 : i32
    return %c0_i32, %c0_i32_0 : i32, i32
  }
  func.func @transform_3(%arg0: i32, %arg1: i32) -> (i32, i32) {
    %c0_i32 = arith.constant 0 : i32
    %c0_i32_0 = arith.constant 0 : i32
    %c0_i32_1 = arith.constant 0 : i32
    return %c0_i32, %c0_i32_0 : i32, i32
  }
  func.func @transform_4(%arg0: i32, %arg1: i32) -> (i32, i32) {
    %c0_i32 = arith.constant 0 : i32
    %c0_i32_0 = arith.constant 0 : i32
    %c0_i32_1 = arith.constant 0 : i32
    return %c0_i32, %c0_i32_0 : i32, i32
  }
  func.func @transform_5(%arg0: i32, %arg1: i32) -> (i32, i32) {
    %c0_i32 = arith.constant 0 : i32
    %c0_i32_0 = arith.constant 0 : i32
    %c0_i32_1 = arith.constant 0 : i32
    return %c0_i32, %c0_i32_0 : i32, i32
  }
  func.func @transform_6(%arg0: i32, %arg1: i32) -> (i32, i32) {
    %c0_i32 = arith.constant 0 : i32
    %c0_i32_0 = arith.constant 0 : i32
    %c0_i32_1 = arith.constant 0 : i32
    return %c0_i32, %c0_i32_0 : i32, i32
  }
  func.func @transform_7(%arg0: i32, %arg1: i32) -> (i32, i32, i32) {
    %c0_i32 = arith.constant 0 : i32
    %c0_i32_0 = arith.constant 0 : i32
    return %arg0, %arg1, %c0_i32 : i32, i32, i32
  }
}

</mosaic_0001>

<bundles_post_ra>
// kernel: end_encoder_block_forward.3
= control target key start
LH: loop header
LB: loop body
LE: loop exit
PB: predicated region body
PF: predicated region fallthrough
CT: control target
= control target key end

     0   :  { %14 = vsyncpa [#allocation3], 0  ;;  %s965_s0 = inlined_call_operand.hbm [shape: f32[16,32], index: 0, kind: input, shape index: {}]   ;;  %s966_s1 = inlined_call_operand.hbm [shape: f32[1,32], index: 1, kind: input, shape index: {}]   ;;  %s967_s2 = inlined_call_operand.hbm [shape: f32[1,32], index: 2, kind: input, shape index: {}]   ;;  %s968_s3 = inlined_call_operand.hbm [shape: f32[32,128], index: 3, kind: input, shape index: {}]   ;;  %s969_s4 = inlined_call_operand.hbm [shape: f32[1,128], index: 4, kind: input, shape index: {}]   ;;  %s970_s5 = inlined_call_operand.hbm [shape: f32[128,64], index: 5, kind: input, shape index: {}]   ;;  %s971_s6 = inlined_call_operand.hbm [shape: f32[1,64], index: 6, kind: input, shape index: {}]   ;;  %s972_s7 = inlined_call_operand.hbm [shape: f32[16,32], index: 7, kind: output, shape index: {0}]   ;;  %s973_s8 = inlined_call_operand.hbm [shape: f32[16,32], index: 8, kind: output, shape index: {1}]  }
   0x1   :  { %15 = vsyncpa [#allocation6], 0 }
   0x2   :  { %16 = vsyncpa [#allocation9], 0 }
   0x3   :  { %17 = vsyncpa [#allocation12], 0 }
   0x4   :  { %18 = vsyncpa [#allocation4], 0 }
   0x5   :  { %19 = vsyncpa [#allocation16], 0  ;;  %s763_s27 = smov [#allocation5]   ;;  %s553_s9 = scalar_lea.hbm %s966_s1, 16 }
   0x6   :  { %s38_s28 = sshll.u32 %s763_s27, 4  ;;  %p554_p0 = scmp.ne.s32.totalorder %s966_s1, %s553_s9  ;;  %s39_s28 = int_to_ptr.vmem [resolvable:$true] %s38_s28 }
   0x7   :  { %p557_p1 = scmp.lt.u32.totalorder %s553_s9, %s966_s1 }
   0x9   :  { %p559_p2 = pnand %p557_p1, %p554_p0 }
   0xb   :  { %562 = shalt.err (!%p559_p2)
}
   0xc   :  { %s563_s14 = scalar_lea.vmem %s39_s28, 16  ;;  %s567_s15 = scalar_lea.vmem %s39_s28, 32 }
   0xd   :  { %p564_p3 = scmp.ne.s32.totalorder %s39_s28, %s563_s14  ;;  %p568_p4 = scmp.lt.s32.totalorder %s39_s28, %s39_s28 }
   0xe   :  { %p569_p5 = scmp.lt.s32.totalorder %s567_s15, %s563_s14 }
  0x10   :  { %p570_p6 = por %p569_p5, %p568_p4 }
  0x12   :  { %p571_p7 = pnand %p570_p6, %p564_p3 }
  0x14   :  { %574 = shalt.err (!%p571_p7)
}
  0x15   :  { %41 = dma.hbm_to_vmem [thread:$0]  %s966_s1, 16, %s39_s28, [#allocation6]  }
  0x16   :  { %s764_s18 = smov [#allocation8]   ;;  %s765_s20 = smov [#allocation11]  }
  0x17   :  { %s57_s19 = sshll.u32 %s764_s18, 4  ;;  %s79_s21 = sshll.u32 %s765_s20, 4  ;;  %s58_s19 = int_to_ptr.vmem [resolvable:$true] %s57_s19  ;;  %s80_s21 = int_to_ptr.vmem [resolvable:$true] %s79_s21 }
  0x18   :  { %s575_s24 = scalar_lea.hbm %s968_s3, 512 }
  0x19   :  { %p576_p8 = scmp.ne.s32.totalorder %s968_s3, %s575_s24  ;;  %p579_p9 = scmp.lt.u32.totalorder %s575_s24, %s968_s3 }
  0x1b   :  { %p581_p10 = pnand %p579_p9, %p576_p8 }
  0x1d   :  { %584 = shalt.err (!%p581_p10)
}
  0x1e   :  { %s585_s1 = scalar_lea.vmem %s58_s19, 512  ;;  %p590_p12 = scmp.lt.s32.totalorder %s58_s19, %s58_s19 }
  0x1f   :  { %p586_p11 = scmp.ne.s32.totalorder %s58_s19, %s585_s1  ;;  %p591_p13 = scmp.lt.s32.totalorder %s585_s1, %s585_s1 }
  0x21   :  { %p592_p0 = por %p591_p13, %p590_p12 }
  0x23   :  { %p593_p1 = pnand %p592_p0, %p586_p11 }
  0x25   :  { %596 = shalt.err (!%p593_p1)
}
  0x26   :  { %s766_s28 = smov 128   ;;  %s767_s30 = smov 8  }
  0x27   :  { %63 = dma.hbm_to_vmem [thread:$0]  %s968_s3, 512, %s58_s19, [#allocation9], %s766_s28, %s766_s28, %s767_s30  }
  0x28   :  { %s597_s13 = scalar_lea.hbm %s970_s5, 2048 }
  0x29   :  { %p598_p2 = scmp.ne.s32.totalorder %s970_s5, %s597_s13  ;;  %p601_p3 = scmp.lt.u32.totalorder %s597_s13, %s970_s5 }
  0x2b   :  { %p603_p4 = pnand %p601_p3, %p598_p2 }
  0x2d   :  { %606 = shalt.err (!%p603_p4)
}
  0x2e   :  { %s607_s18 = scalar_lea.vmem %s80_s21, 2048  ;;  %p612_p6 = scmp.lt.s32.totalorder %s80_s21, %s80_s21 }
  0x2f   :  { %p608_p5 = scmp.ne.s32.totalorder %s80_s21, %s607_s18  ;;  %p613_p7 = scmp.lt.s32.totalorder %s607_s18, %s607_s18 }
  0x31   :  { %p614_p8 = por %p613_p7, %p612_p6 }
  0x33   :  { %p615_p9 = pnand %p614_p8, %p608_p5 }
  0x35   :  { %618 = shalt.err (!%p615_p9)
}
  0x36   :  { %85 = dma.hbm_to_vmem [thread:$0]  %s970_s5, 2048, %s80_s21, [#allocation12], %s766_s28, %s766_s28, %s767_s30  }
  0x37   :  { %s768_s20 = smov [#allocation2]   ;;  %s769_s23 = smov [#allocation7]  }
  0x38   :  { %s25_s22 = sshll.u32 %s768_s20, 4  ;;  %s48_s24 = sshll.u32 %s769_s23, 4  ;;  %s26_s22 = int_to_ptr.vmem [resolvable:$true] %s25_s22  ;;  %s49_s24 = int_to_ptr.vmem [resolvable:$true] %s48_s24 }
  0x39   :  { %s619_s27 = scalar_lea.hbm %s965_s0, 256 }
  0x3a   :  { %p620_p10 = scmp.ne.s32.totalorder %s965_s0, %s619_s27  ;;  %p623_p11 = scmp.lt.u32.totalorder %s619_s27, %s965_s0 }
  0x3c   :  { %p625_p12 = pnand %p623_p11, %p620_p10 }
  0x3e   :  { %628 = shalt.err (!%p625_p12)
}
  0x3f   :  { %s629_s5 = scalar_lea.vmem %s26_s22, 256  ;;  %p634_p0 = scmp.lt.s32.totalorder %s26_s22, %s26_s22 }
  0x40   :  { %p630_p13 = scmp.ne.s32.totalorder %s26_s22, %s629_s5  ;;  %p635_p1 = scmp.lt.s32.totalorder %s629_s5, %s629_s5 }
  0x42   :  { %p636_p2 = por %p635_p1, %p634_p0 }
  0x44   :  { %p637_p3 = pnand %p636_p2, %p630_p13 }
  0x46   :  { %640 = shalt.err (!%p637_p3)
}
  0x47   :  { %31 = dma.hbm_to_vmem [thread:$0]  %s965_s0, 256, %s26_s22, [#allocation3], %s766_s28, %s766_s28, %s767_s30  }
  0x48   :  { %s641_s14 = scalar_lea.hbm %s967_s2, 16 }
  0x49   :  { %p642_p4 = scmp.ne.s32.totalorder %s967_s2, %s641_s14  ;;  %p645_p5 = scmp.lt.u32.totalorder %s641_s14, %s967_s2 }
  0x4b   :  { %p647_p6 = pnand %p645_p5, %p642_p4 }
  0x4d   :  { %650 = shalt.err (!%p647_p6)
}
  0x4e   :  { %s651_s3 = scalar_lea.vmem %s49_s24, 16  ;;  %s655_s19 = scalar_lea.vmem %s49_s24, 32 }
  0x4f   :  { %p652_p7 = scmp.ne.s32.totalorder %s49_s24, %s651_s3  ;;  %p656_p8 = scmp.lt.s32.totalorder %s49_s24, %s49_s24 }
  0x50   :  { %p657_p9 = scmp.lt.s32.totalorder %s655_s19, %s651_s3 }
  0x52   :  { %p658_p10 = por %p657_p9, %p656_p8 }
  0x54   :  { %p659_p11 = pnand %p658_p10, %p652_p7 }
  0x56   :  { %662 = shalt.err (!%p659_p11)
}
  0x57   :  { %51 = dma.hbm_to_vmem [thread:$0]  %s967_s2, 16, %s49_s24, [#allocation6]  }
  0x58   :  { %s770_s22 = smov [#allocation10]   ;;  %s771_s25 = smov [#allocation13]  }
  0x59   :  { %s70_s23 = sshll.u32 %s770_s22, 4  ;;  %s92_s26 = sshll.u32 %s771_s25, 4  ;;  %s71_s23 = int_to_ptr.vmem [resolvable:$true] %s70_s23  ;;  %s93_s26 = int_to_ptr.vmem [resolvable:$true] %s92_s26 }
  0x5a   :  { %s663_s1 = scalar_lea.hbm %s969_s4, 16 }
  0x5b   :  { %p664_p12 = scmp.ne.s32.totalorder %s969_s4, %s663_s1  ;;  %p667_p13 = scmp.lt.u32.totalorder %s663_s1, %s969_s4 }
  0x5d   :  { %p669_p0 = pnand %p667_p13, %p664_p12 }
  0x5f   :  { %672 = shalt.err (!%p669_p0)
}
  0x60   :  { %s673_s2 = scalar_lea.vmem %s71_s23, 16  ;;  %s677_s24 = scalar_lea.vmem %s71_s23, 32 }
  0x61   :  { %p674_p1 = scmp.ne.s32.totalorder %s71_s23, %s673_s2  ;;  %p678_p2 = scmp.lt.s32.totalorder %s71_s23, %s71_s23 }
  0x62   :  { %p679_p3 = scmp.lt.s32.totalorder %s677_s24, %s673_s2 }
  0x64   :  { %p680_p4 = por %p679_p3, %p678_p2 }
  0x66   :  { %p681_p5 = pnand %p680_p4, %p674_p1 }
  0x68   :  { %684 = shalt.err (!%p681_p5)
}
  0x69   :  { %73 = dma.hbm_to_vmem [thread:$0]  %s969_s4, 16, %s71_s23, [#allocation9]  }
  0x6a   :  { %s685_s15 = scalar_lea.hbm %s971_s6, 16 }
  0x6b   :  { %p686_p6 = scmp.ne.s32.totalorder %s971_s6, %s685_s15  ;;  %p689_p7 = scmp.lt.u32.totalorder %s685_s15, %s971_s6 }
  0x6d   :  { %p691_p8 = pnand %p689_p7, %p686_p6 }
  0x6f   :  { %694 = shalt.err (!%p691_p8)
}
  0x70   :  { %s695_s19 = scalar_lea.vmem %s93_s26, 16  ;;  %s699_s0 = scalar_lea.vmem %s93_s26, 32 }
  0x71   :  { %p696_p9 = scmp.ne.s32.totalorder %s93_s26, %s695_s19  ;;  %p700_p10 = scmp.lt.s32.totalorder %s93_s26, %s93_s26 }
  0x72   :  { %p701_p11 = scmp.lt.s32.totalorder %s699_s0, %s695_s19 }
  0x74   :  { %p702_p12 = por %p701_p11, %p700_p10 }
  0x76   :  { %p703_p13 = pnand %p702_p12, %p696_p9 }
  0x78   :  { %706 = shalt.err (!%p703_p13)
}
  0x79   :  { %95 = dma.hbm_to_vmem [thread:$0]  %s971_s6, 16, %s93_s26, [#allocation12]  }
  0x7a   :  { %751 = dma.done.wait [#allocation3], 256  }
  0x7b   :  { %752 = vsyncadd [#allocation3], 4294967040 }
  0x7c   :  { %753 = dma.done.wait [#allocation6], 32  }
  0x7d   :  { %754 = vsyncadd [#allocation6], 4294967264 }
  0x7e   :  { %755 = dma.done.wait [#allocation9], 528  }
  0x7f   :  { %756 = vsyncadd [#allocation9], 4294966768 }
  0x80   :  { %757 = dma.done.wait [#allocation12], 2064  }
  0x81   :  { %758 = vsyncadd [#allocation12], 4294965232  ;;  %vm121_vm0 = vcmask 261120   ;;  %v913_v0 = vld [vmem:[#allocation2] sm:$0xff]  ;;  %v915_v1 = vld [vmem:[#allocation2 + $0x8] sm:$0xff]  ;;  %s772_s6 = smov [#allocation14]  }
  0x82   :  { %v122_v2 = vsel %vm121_vm0, %v913_v0, 0.0  ;;  %v125_v3 = vsel %vm121_vm0, %v915_v1, 0.0  ;;  %v165_v14 = vld [vmem:[#allocation8] sm:$0xff]  ;;  %v166_v15 = vld [vmem:[#allocation8 + $0x8] sm:$0xff]  ;;  %v167_v16 = vld [vmem:[#allocation8 + $0x10] sm:$0xff]  ;;  %s386_s22 = sshll.u32 %s772_s6, 4  ;;  %s387_s22 = int_to_ptr.vmem [resolvable:$true] %s386_s22 }
  0x83   :  { %123 = vadd.xlane.f32.xlu0 %v122_v2  ;;  %v493_v17 = vpack.c.bf16 %v166_v15, %v165_v14  ;;  %v168_v18 = vld [vmem:[#allocation8 + $0x18] sm:$0xff]  ;;  %v267_v20 = vld [vmem:[#allocation11] sm:$0xff]  ;;  %v268_v21 = vld [vmem:[#allocation11 + $0x8] sm:$0xff]  ;;  %s773_s23 = smov 96   ;;  %s707_s25 = scalar_lea.vmem %s387_s22, 256 }
  0x84   :  { %v497_v19 = vpack.c.bf16 %v168_v18, %v167_v16  ;;  %v269_v22 = vld [vmem:[#allocation11 + $0x10] sm:$0xff]  ;;  %v501_v23 = vpack.c.bf16 %v268_v21, %v267_v20  ;;  %v270_v24 = vld [vmem:[#allocation11 + $0x18] sm:$0xff]  ;;  %v271_v26 = vld [vmem:[#allocation11 + $0x20] sm:$0xff]  ;;  %p708_p0 = scmp.ne.s32.totalorder %s387_s22, %s707_s25  ;;  %p712_p1 = scmp.lt.s32.totalorder %s387_s22, %s387_s22 }
  0x85   :  { %494 = vmatprep.subr.bf16.mxu0 %v493_v17  ;;  %v505_v25 = vpack.c.bf16 %v270_v24, %v269_v22  ;;  %v272_v27 = vld [vmem:[#allocation11 + $0x28] sm:$0xff]  ;;  %v417_v36 = vld [vmem:[#allocation5] ss:$0 sm:$0xff]  ;;  %v418_v38 = vld [vmem:[#allocation7] ss:$0 sm:$0xff]  ;;  %p713_p2 = scmp.lt.s32.totalorder %s707_s25, %s707_s25 }
  0x86   :  { %496 = vmatpush3.bf16.msra.mxu0 %v493_v17  ;;  %502 = vmatprep.subr.bf16.mxu1 %v501_v23  ;;  %v509_v28 = vpack.c.bf16 %v272_v27, %v271_v26  ;;  %v273_v45 = vld [vmem:[#allocation11 + $0x30] sm:$0xff]  ;;  %v274_v46 = vld [vmem:[#allocation11 + $0x38] sm:$0xff]  ;;  %v275_v48 = vld [vmem:[#allocation11 + $0x40] sm:$0xff] }
  0x87   :  { %126 = vadd.xlane.f32.xlu0 %v125_v3  ;;  %498 = vmatprep.subr.bf16.mxu0 %v497_v19  ;;  %v513_v47 = vpack.c.bf16 %v274_v46, %v273_v45  ;;  %v276_v49 = vld [vmem:[#allocation11 + $0x48] sm:$0xff]  ;;  %v277_v51 = vld [vmem:[#allocation11 + $0x50] sm:$0xff]  ;;  %v278_v52 = vld [vmem:[#allocation11 + $0x58] sm:$0xff]  ;;  %p714_p3 = por %p713_p2, %p712_p1 }
  0x88   :  { %504 = vmatpush3.bf16.msra.mxu1 %v501_v23  ;;  %v517_v50 = vpack.c.bf16 %v276_v49, %v275_v48  ;;  %v521_v53 = vpack.c.bf16 %v278_v52, %v277_v51  ;;  %v279_v54 = vld [vmem:[#allocation11 + $0x60] sm:$0xff]  ;;  %v280_v55 = vld [vmem:[#allocation11 + $0x68] sm:$0xff]  ;;  %v281_v57 = vld [vmem:[#allocation11 + $0x70] sm:$0xff] }
  0x89   :  { %506 = vmatprep.subr.bf16.mxu1 %v505_v25  ;;  %v525_v56 = vpack.c.bf16 %v280_v55, %v279_v54  ;;  %v282_v58 = vld [vmem:[#allocation11 + $0x78] sm:$0xff]  ;;  %p715_p4 = pnand %p714_p3, %p708_p0 }
  0x8a   :  { %500 = vmatpush3.bf16.msra.mxu0 %v497_v19  ;;  %v529_v59 = vpack.c.bf16 %v282_v58, %v281_v57  ;;  %v419_v60 = vld [vmem:[#allocation10] ss:$0 sm:$0xff] }
  0x8c   :  { %508 = vmatpush3.bf16.msra.mxu1 %v505_v25 }
  0x8d   :  { %510 = vmatprep.subr.bf16.mxu1 %v509_v28 }
  0x90   :  { %512 = vmatpush3.bf16.msra.mxu1 %v509_v28 }
  0x91   :  { %514 = vmatprep.subr.bf16.mxu1 %v513_v47 }
  0x94   :  { %516 = vmatpush3.bf16.msra.mxu1 %v513_v47 }
  0x95   :  { %518 = vmatprep.subr.bf16.mxu1 %v517_v50 }
  0x98   :  { %520 = vmatpush3.bf16.msra.mxu1 %v517_v50 }
  0x99   :  { %522 = vmatprep.subr.bf16.mxu1 %v521_v53 }
  0x9c   :  { %524 = vmatpush3.bf16.msra.mxu1 %v521_v53 }
  0x9d   :  { %526 = vmatprep.subr.bf16.mxu1 %v525_v56 }
  0xa0   :  { %528 = vmatpush3.bf16.msra.mxu1 %v525_v56 }
  0xa1   :  { %530 = vmatprep.subr.bf16.mxu1 %v529_v59 }
  0xa4   :  { %532 = vmatpush3.bf16.msra.mxu1 %v529_v59 }
 0x110   :  { %v124_v4 = vpop.xlane.xlu0 %123 }
 0x111   :  { %v129_v5 = vmul.f32 0.03125, %v124_v4 }
 0x113   :  { %v131_v6 = vsub.f32 %v913_v0, %v129_v5 }
 0x114   :  { %v127_v7 = vpop.xlane.xlu0 %126 }
 0x115   :  { %v130_v8 = vmul.f32 0.03125, %v127_v7  ;;  %v133_v9 = vmul.f32 %v131_v6, %v131_v6 }
 0x117   :  { %v132_v10 = vsub.f32 %v915_v1, %v130_v8  ;;  %v135_v11 = vsel %vm121_vm0, %v133_v9, 0.0 }
 0x118   :  { %136 = vadd.xlane.f32.xlu1 %v135_v11 }
 0x119   :  { %v134_v12 = vmul.f32 %v132_v10, %v132_v10 }
 0x11b   :  { %v138_v13 = vsel %vm121_vm0, %v134_v12, 0.0 }
 0x11c   :  { %139 = vadd.xlane.f32.xlu1 %v138_v13  ;;  %v422_v13 = vld [vmem:[#allocation13] ss:$0 sm:$0xff] }
 0x1a5   :  { %v137_v29 = vpop.xlane.xlu1 %136 }
 0x1a6   :  { %v141_v30 = vmul.f32 0.03125, %v137_v29 }
 0x1a8   :  { %v143_v31 = vadd.f32 1e-05, %v141_v30 }
 0x1a9   :  { %v140_v32 = vpop.xlane.xlu1 %139 }
 0x1aa   :  { %545 = vrsqrt.f32 %v143_v31  ;;  %v142_v33 = vmul.f32 0.03125, %v140_v32 }
 0x1ac   :  { %v144_v34 = vadd.f32 1e-05, %v142_v33 }
 0x1ae   :  { %547 = vrsqrt.f32 %v144_v34 }
 0x1b4   :  { %v546_v35 = vpop.eup %545 }
 0x1b5   :  { %v147_v37 = vmul.f32 %v546_v35, %v131_v6 }
 0x1b7   :  { %v155_v39 = vmul.f32 %v417_v36, %v147_v37 }
 0x1b8   :  { %v548_v40 = vpop.eup %547 }
 0x1b9   :  { %v148_v41 = vmul.f32 %v548_v40, %v132_v10  ;;  %v163_v42 = vadd.f32 %v418_v38, %v155_v39 }
 0x1bb   :  { %v156_v43 = vmul.f32 %v417_v36, %v148_v41  ;;  %455 = vmatprep.mubr.msk.f32.mxu0 %vm121_vm0, %v163_v42 }
 0x1bd   :  { %v164_v44 = vadd.f32 %v418_v38, %v156_v43 }
 0x1bf   :  { %456 = vmatmul.mubr.msk.f32.vlgmr.msra.gmra.mrb[0].mxu0 %vm121_vm0, %v164_v44 }
 0x292   :  { %v457_v61 = vpop.f32.mrb[0].mxu0 }
 0x293   :  { %v254_v62 = vadd.f32 %v457_v61, %v419_v60  ;;  %v248_v63 = vpop.f32.mrb[1].mxu0 }
 0x294   :  { %v249_v2 = vadd.f32 %v419_v60, %v248_v63 }
 0x295   :  { %v260_v3 = vmul.f32 0.70710677, %v254_v62  ;;  %v258_v10 = vmul.f32 0.5, %v254_v62 }
 0x296   :  { %v259_v4 = vmul.f32 0.70710677, %v249_v2  ;;  %v257_v8 = vmul.f32 0.5, %v249_v2 }
 0x297   :  { %549 = verf.f32 %v260_v3 }
 0x298   :  { %551 = verf.f32 %v259_v4 }
 0x2a1   :  { %v550_v5 = vpop.eup %549 }
 0x2a2   :  { %v552_v6 = vpop.eup %551  ;;  %v264_v7 = vadd.f32 1.0, %v550_v5 }
 0x2a3   :  { %v263_v9 = vadd.f32 1.0, %v552_v6 }
 0x2a4   :  { %v266_v12 = vmul.f32 %v264_v7, %v258_v10 }
 0x2a5   :  { %v265_v11 = vmul.f32 %v263_v9, %v257_v8 }
 0x2a7   :  { %490 = vmatprep.mubr.f32.mxu1 %v265_v11 }
 0x2a8   :  { %491 = vmatmul.mubr.f32.vlgmr.msra.gmra.mrb[0].mxu1 %v266_v12 }
 0x37b   :  { %v492_v14 = vpop.f32.mrb[0].mxu1 }
 0x37c   :  { %v362_v15 = vadd.f32 %v492_v14, %v422_v13  ;;  %v356_v16 = vpop.f32.mrb[1].mxu1 }
 0x37d   :  { %v357_v17 = vadd.f32 %v422_v13, %v356_v16 }
 0x37e   :  { %v366_v18 = vadd.f32 %v362_v15, %v915_v1  ;;  %373 = vrot.lane.b32.xlu1 %v362_v15, %s773_s23 }
 0x37f   :  { %v365_v19 = vadd.f32 %v357_v17, %v913_v0  ;;  %371 = vrot.lane.b32.xlu0 %v357_v17, %s773_s23 }
 0x380   :  { %368 = vst.msk [vmem:[#allocation14 + $0x8] sm:$0xff] %vm121_vm0, %v366_v18 }
 0x381   :  { %367 = vst.msk [vmem:[#allocation14] sm:$0xff] %vm121_vm0, %v365_v19 }
 0x382   :  { %718 = shalt.err (!%p715_p4)
}
 0x383   :  { %s719_s29 = scalar_lea.hbm %s972_s7, 256 }
 0x384   :  { %p720_p5 = scmp.ne.s32.totalorder %s972_s7, %s719_s29  ;;  %p723_p6 = scmp.lt.u32.totalorder %s719_s29, %s972_s7 }
 0x386   :  { %p725_p7 = pnand %p723_p6, %p720_p5 }
 0x388   :  { %728 = shalt.err (!%p725_p7)
}
 0x389   :  { %392 = dma.vmem_to_hbm [thread:$0]  %s387_s22, 256, %s972_s7, [#allocation4], %s766_s28, %s766_s28, %s767_s30  }
 0x38a   :  { %s774_s24 = smov [#allocation15]  }
 0x38b   :  { %s398_s11 = sshll.u32 %s774_s24, 4  ;;  %s399_s11 = int_to_ptr.vmem [resolvable:$true] %s398_s11 }
 0x38c   :  { %s729_s12 = scalar_lea.vmem %s399_s11, 256  ;;  %p734_p9 = scmp.lt.s32.totalorder %s399_s11, %s399_s11 }
 0x38d   :  { %p730_p8 = scmp.ne.s32.totalorder %s399_s11, %s729_s12  ;;  %p735_p10 = scmp.lt.s32.totalorder %s729_s12, %s729_s12 }
 0x38f   :  { %p736_p11 = por %p735_p10, %p734_p9 }
 0x391   :  { %p737_p12 = pnand %p736_p11, %p730_p8 }
 0x3f0   :  { %v374_v20 = vpop.permute.xlu1 %373 }
 0x3f1   :  { %v378_v21 = vadd.f32 %v374_v20, %v915_v1  ;;  %v372_v22 = vpop.permute.xlu0 %371 }
 0x3f2   :  { %v377_v23 = vadd.f32 %v372_v22, %v913_v0 }
 0x3f3   :  { %380 = vst.msk [vmem:[#allocation15 + $0x8] sm:$0xff] %vm121_vm0, %v378_v21 }
 0x3f4   :  { %379 = vst.msk [vmem:[#allocation15] sm:$0xff] %vm121_vm0, %v377_v23 }
 0x3f5   :  { %740 = shalt.err (!%p737_p12)
}
 0x3f6   :  { %s741_s14 = scalar_lea.hbm %s973_s8, 256 }
 0x3f7   :  { %p742_p13 = scmp.ne.s32.totalorder %s973_s8, %s741_s14  ;;  %p745_p0 = scmp.lt.u32.totalorder %s741_s14, %s973_s8 }
 0x3f9   :  { %p747_p1 = pnand %p745_p0, %p742_p13 }
 0x3fb   :  { %750 = shalt.err (!%p747_p1)
}
 0x3fc   :  { %404 = dma.vmem_to_hbm [thread:$0]  %s399_s11, 256, %s973_s8, [#allocation16], %s766_s28, %s766_s28, %s767_s30  }
 0x3fd   :  { %759 = dma.done.wait [#allocation4], 256  }
 0x3fe   :  { %760 = vsyncadd [#allocation4], 4294967040 }
 0x3ff   :  { %761 = dma.done.wait [#allocation16], 256  }
 0x400   :  { %762 = vsyncadd [#allocation16], 4294967040 }
 0x401   :  { %411 = vsyncpa [#allocation3], 1 }
 0x402   :  { %412 = vsyncpa [#allocation6], 1 }
 0x403   :  { %413 = vsyncpa [#allocation9], 1 }
 0x404   :  { %414 = vsyncpa [#allocation12], 1 }
 0x405   :  { %415 = vsyncpa [#allocation4], 1 }
 0x406   :  { %416 = vsyncpa [#allocation16], 1 }

// kernel: end_encoder_block_forward.2
= control target key start
LH: loop header
LB: loop body
LE: loop exit
PB: predicated region body
PF: predicated region fallthrough
CT: control target
= control target key end

     0   :  { %s2727_s0 = inlined_call_operand.hbm [shape: f32[2,8,32], index: 0, kind: input, shape index: {}]   ;;  %s2728_s1 = inlined_call_operand.hbm [shape: f32[1,32], index: 1, kind: input, shape index: {}]   ;;  %s2729_s2 = inlined_call_operand.hbm [shape: f32[1,32], index: 2, kind: input, shape index: {}]   ;;  %s2730_s3 = inlined_call_operand.hbm [shape: f32[32,96], index: 3, kind: input, shape index: {}]   ;;  %s2731_s4 = inlined_call_operand.hbm [shape: f32[1,96], index: 4, kind: input, shape index: {}]   ;;  %s2732_s5 = inlined_call_operand.hbm [shape: f32[32,32], index: 5, kind: input, shape index: {}]   ;;  %s2733_s6 = inlined_call_operand.hbm [shape: f32[1,32], index: 6, kind: input, shape index: {}]   ;;  %s2734_s7 = inlined_call_operand.hbm [shape: f32[2,8,32], index: 7, kind: output, shape index: {}]  }
   0x1   :  { %2740 = sst [smem:[#allocation21_spill]] %s2728_s1 }
   0x2   :  { %2741 = sst [smem:[#allocation22_spill]] %s2730_s3 }
   0x3   :  { %12 = vsyncpa [#allocation4], 0 }
   0x4   :  { %14 = vsyncpa [#allocation4 + $0x1], 0 }
   0x5   :  { %15 = vsyncpa [#allocation7], 0 }
   0x6   :  { %16 = vsyncpa [#allocation10], 0 }
   0x7   :  { %17 = vsyncpa [#allocation13], 0 }
   0x8   :  { %18 = vsyncpa [#allocation5], 0 }
   0x9   :  { %20 = vsyncpa [#allocation5 + $0x1], 0  ;;  %s2310_s24 = smov 0   ;;  %s2312_s25 = smov 0  }
   0xa   :  { %s2314_s26 = smov 0   ;;  %s2316_s27 = smov 0  }
   0xb   :  { %s2318_s28 = smov 0   ;;  %s2320_s29 = smov 0  }
   0xc LB: > { %s2738_s30 = sadd.s32 4294967295, %s2247_s29   ;;  %p1594_p0 = scmp.ge.s32.totalorder %s2247_s29, 1  ;;  %s2247_s29 = sphi %s2320_s29, %s26_s29   ;;  %s2243_s28 = sphi %s2318_s28, %s2764_s28   ;;  %s2239_s27 = sphi %s2316_s27, %s2763_s27   ;;  %s2235_s26 = sphi %s2314_s26, %s2762_s26   ;;  %s2231_s25 = sphi %s2312_s25, %s2761_s25   ;;  %s2227_s24 = sphi %s2310_s24, %s2760_s24  }
   0xd   : > { %p2344_p1 = scmp.eq.s32.totalorder %s2738_s30, 0  ;;  %p223_p2 = scmp.lt.s32.totalorder %s2247_s29, 3 }
   0xe   : > { %s2249_s10 = smov [#allocation6]   ;;  %s2250_s12 = smov [#allocation9]  }
   0xf   : > { %s2742_s8 = scalar_select %p2344_p1, 1, 0 }
  0x10   : > { %p2349_p3 = pnand %p1594_p0, %p223_p2  ;;  %s236_s11 = sshll.u32 %s2249_s10, 4  ;;  %s237_s11 = int_to_ptr.vmem [resolvable:$true] %s236_s11 }
  0x11   : > { %s257_s13 = sshll.u32 %s2250_s12, 4  ;;  %s2251_s15 = smov [#allocation12]   ;;  %s2362_s13 = int_to_ptr.vmem [resolvable:$true] %s257_s13 }
  0x12   : > { %s2743_s9 = scalar_select %p2349_p3, 1, 0 }
  0x13   : > { %p1809_p5 = pneg %p2349_p3  ;;  %s2364_s16 = sshll.u32 %s2251_s15, 4  ;;  %s282_s16 = int_to_ptr.vmem [resolvable:$true] %s2364_s16 }
  0x14   : > { %s2745_s1 = sld [smem:[#allocation21_spill]] }
  0x15   : > { %p2358_p6 = pnand %p1809_p5, %p2344_p1 }
  0x17   : > { %p2374_p8 = pneg %p2358_p6 }
  0x1a   : > { %s1955_s19 = scalar_lea.hbm %s2745_s1, 16 }
  0x1b   : > { %p1956_p7 = scmp.ne.s32.totalorder %s2745_s1, %s1955_s19  ;;  %p1962_p11 = scmp.lt.u32.totalorder %s1955_s19, %s2745_s1 }
  0x1d   : > { %p1958_p9 = pnand %p2374_p8, %p1956_p7 }
  0x1f   : > { %p1959_p10 = pneg %p1958_p9 }
  0x21   : > { %p1964_p12 = pnand %p1962_p11, %p1959_p10 }
  0x23   : > { %1967 = shalt.err (!%p1964_p12)
}
  0x24   : > { %s1968_s12 = scalar_lea.vmem %s237_s11, 16  ;;  %s1975_s15 = scalar_lea.vmem %s237_s11, 32 }
  0x25   : > { %p1969_p13 = scmp.ne.s32.totalorder %s237_s11, %s1968_s12  ;;  %p1976_p5 = scmp.lt.s32.totalorder %s237_s11, %s237_s11 }
  0x26   : > { %p1977_p4 = scmp.lt.s32.totalorder %s1975_s15, %s1968_s12 }
  0x27   : > { %p1971_p0 = pnand %p1969_p13, %p2374_p8 }
  0x28   : > { %p1978_p3 = por %p1977_p4, %p1976_p5 }
  0x29   : > { %p1972_p2 = pneg %p1971_p0 }
  0x2b   : > { %p1979_p1 = pnand %p1978_p3, %p1972_p2 }
  0x2d   : > { %1982 = shalt.err (!%p1979_p1)
}
  0x2e   : > { %1812 = dma.hbm_to_vmem [thread:$0]  (!%p2358_p6), %s2745_s1, 16, %s237_s11, [#allocation7]  }
  0x2f   : > { %s2747_s3 = sld [smem:[#allocation22_spill]] }
  0x35   : > { %s1983_s21 = scalar_lea.hbm %s2747_s3, 512 }
  0x36   : > { %p1984_p7 = scmp.ne.s32.totalorder %s2747_s3, %s1983_s21  ;;  %p1990_p1 = scmp.lt.u32.totalorder %s1983_s21, %s2747_s3 }
  0x38   : > { %p1986_p9 = pnand %p1984_p7, %p2374_p8 }
  0x3a   : > { %p1987_p4 = pneg %p1986_p9 }
  0x3c   : > { %p1992_p3 = pnand %p1990_p1, %p1987_p4 }
  0x3e   : > { %1995 = shalt.err (!%p1992_p3)
}
  0x3f   : > { %s1996_s11 = scalar_lea.vmem %s2362_s13, 512  ;;  %p2004_p13 = scmp.lt.s32.totalorder %s2362_s13, %s2362_s13 }
  0x40   : > { %p1997_p10 = scmp.ne.s32.totalorder %s2362_s13, %s1996_s11  ;;  %p2005_p0 = scmp.lt.s32.totalorder %s1996_s11, %s1996_s11 }
  0x42   : > { %p1999_p11 = pnand %p1997_p10, %p2374_p8  ;;  %p2006_p2 = por %p2005_p0, %p2004_p13 }
  0x44   : > { %p2000_p12 = pneg %p1999_p11 }
  0x46   : > { %p2007_p5 = pnand %p2006_p2, %p2000_p12 }
  0x48   : > { %2010 = shalt.err (!%p2007_p5)
}
  0x49   : > { %s2252_s17 = smov 128   ;;  %s2253_s18 = smov 8  }
  0x4a   : > { %1818 = dma.hbm_to_vmem [thread:$0]  (!%p2358_p6), %s2747_s3, 512, %s2362_s13, [#allocation10], %s2252_s17, %s2252_s17, %s2253_s18  }
  0x4b   : > { %s2011_s10 = scalar_lea.hbm %s2732_s5, 512 }
  0x4c   : > { %p2012_p7 = scmp.ne.s32.totalorder %s2732_s5, %s2011_s10  ;;  %p2018_p1 = scmp.lt.u32.totalorder %s2011_s10, %s2732_s5 }
  0x4e   : > { %p2014_p9 = pnand %p2012_p7, %p2374_p8 }
  0x50   : > { %p2015_p4 = pneg %p2014_p9 }
  0x52   : > { %p2020_p3 = pnand %p2018_p1, %p2015_p4 }
  0x54   : > { %2023 = shalt.err (!%p2020_p3)
}
  0x55   : > { %s2024_s19 = scalar_lea.vmem %s282_s16, 512  ;;  %p2032_p13 = scmp.lt.s32.totalorder %s282_s16, %s282_s16 }
  0x56   : > { %p2025_p10 = scmp.ne.s32.totalorder %s282_s16, %s2024_s19  ;;  %p2033_p0 = scmp.lt.s32.totalorder %s2024_s19, %s2024_s19 }
  0x58   : > { %p2027_p11 = pnand %p2025_p10, %p2374_p8  ;;  %p2034_p2 = por %p2033_p0, %p2032_p13 }
  0x5a   : > { %p2028_p12 = pneg %p2027_p11 }
  0x5c   : > { %p2035_p5 = pnand %p2034_p2, %p2028_p12 }
  0x5e   : > { %2038 = shalt.err (!%p2035_p5)
}
  0x5f   : > { %1824 = dma.hbm_to_vmem [thread:$0]  (!%p2358_p6), %s2732_s5, 512, %s282_s16, [#allocation13], %s2252_s17, %s2252_s17, %s2253_s18  }
  0x60   : > { %s2254_s30 = smov [#allocation8]   ;;  %s2255_s23 = smov [#allocation11]  }
  0x61   : > { %s247_s21 = sshll.u32 %s2254_s30, 4  ;;  %s271_s10 = sshll.u32 %s2255_s23, 4  ;;  %s248_s21 = int_to_ptr.vmem [resolvable:$true] %s247_s21  ;;  %s272_s10 = int_to_ptr.vmem [resolvable:$true] %s271_s10 }
  0x62   : > { %s2039_s11 = scalar_lea.hbm %s2729_s2, 16 }
  0x63   : > { %p2040_p7 = scmp.ne.s32.totalorder %s2729_s2, %s2039_s11  ;;  %p2046_p1 = scmp.lt.u32.totalorder %s2039_s11, %s2729_s2 }
  0x65   : > { %p2042_p9 = pnand %p2040_p7, %p2374_p8 }
  0x67   : > { %p2043_p4 = pneg %p2042_p9 }
  0x69   : > { %p2048_p3 = pnand %p2046_p1, %p2043_p4 }
  0x6b   : > { %2051 = shalt.err (!%p2048_p3)
}
  0x6c   : > { %s2052_s16 = scalar_lea.vmem %s248_s21, 16  ;;  %s2059_s17 = scalar_lea.vmem %s248_s21, 32 }
  0x6d   : > { %p2053_p10 = scmp.ne.s32.totalorder %s248_s21, %s2052_s16  ;;  %p2060_p13 = scmp.lt.s32.totalorder %s248_s21, %s248_s21 }
  0x6e   : > { %p2061_p0 = scmp.lt.s32.totalorder %s2059_s17, %s2052_s16 }
  0x6f   : > { %p2055_p11 = pnand %p2053_p10, %p2374_p8 }
  0x70   : > { %p2062_p2 = por %p2061_p0, %p2060_p13 }
  0x71   : > { %p2056_p12 = pneg %p2055_p11 }
  0x73   : > { %p2063_p5 = pnand %p2062_p2, %p2056_p12 }
  0x75   : > { %2066 = shalt.err (!%p2063_p5)
}
  0x76   : > { %1815 = dma.hbm_to_vmem [thread:$0]  (!%p2358_p6), %s2729_s2, 16, %s248_s21, [#allocation7]  }
  0x77   : > { %s2067_s30 = scalar_lea.hbm %s2731_s4, 16 }
  0x78   : > { %p2068_p7 = scmp.ne.s32.totalorder %s2731_s4, %s2067_s30  ;;  %p2074_p1 = scmp.lt.u32.totalorder %s2067_s30, %s2731_s4 }
  0x7a   : > { %p2070_p9 = pnand %p2068_p7, %p2374_p8 }
  0x7c   : > { %p2071_p4 = pneg %p2070_p9 }
  0x7e   : > { %p2076_p3 = pnand %p2074_p1, %p2071_p4 }
  0x80   : > { %2079 = shalt.err (!%p2076_p3)
}
  0x81   : > { %s2080_s19 = scalar_lea.vmem %s272_s10, 16  ;;  %s2087_s21 = scalar_lea.vmem %s272_s10, 32 }
  0x82   : > { %p2081_p10 = scmp.ne.s32.totalorder %s272_s10, %s2080_s19  ;;  %p2088_p13 = scmp.lt.s32.totalorder %s272_s10, %s272_s10 }
  0x83   : > { %p2089_p0 = scmp.lt.s32.totalorder %s2087_s21, %s2080_s19 }
  0x84   : > { %p2083_p11 = pnand %p2081_p10, %p2374_p8 }
  0x85   : > { %p2090_p2 = por %p2089_p0, %p2088_p13 }
  0x86   : > { %p2084_p12 = pneg %p2083_p11 }
  0x88   : > { %p2091_p5 = pnand %p2090_p2, %p2084_p12 }
  0x8a   : > { %2094 = shalt.err (!%p2091_p5)
}
  0x8b   : > { %1821 = dma.hbm_to_vmem [thread:$0]  (!%p2358_p6), %s2731_s4, 16, %s272_s10, [#allocation10]  }
  0x8c   : > { %s2256_s17 = smov [#allocation14]   ;;  %s2095_s20 = scalar_lea.hbm %s2733_s6, 16 }
  0x8d   : > { %s295_s1 = sshll.u32 %s2256_s17, 4  ;;  %p2096_p7 = scmp.ne.s32.totalorder %s2733_s6, %s2095_s20  ;;  %s296_s1 = int_to_ptr.vmem [resolvable:$true] %s295_s1 }
  0x8e   : > { %p2102_p1 = scmp.lt.u32.totalorder %s2095_s20, %s2733_s6 }
  0x8f   : > { %p2098_p9 = pnand %p2096_p7, %p2374_p8 }
  0x91   : > { %p2099_p4 = pneg %p2098_p9 }
  0x93   : > { %p2104_p3 = pnand %p2102_p1, %p2099_p4 }
  0x95   : > { %2107 = shalt.err (!%p2104_p3)
}
  0x96   : > { %s2108_s10 = scalar_lea.vmem %s296_s1, 16  ;;  %s2115_s11 = scalar_lea.vmem %s296_s1, 32 }
  0x97   : > { %p2109_p10 = scmp.ne.s32.totalorder %s296_s1, %s2108_s10  ;;  %p2116_p13 = scmp.lt.s32.totalorder %s296_s1, %s296_s1 }
  0x98   : > { %p2117_p0 = scmp.lt.s32.totalorder %s2115_s11, %s2108_s10 }
  0x99   : > { %p2111_p11 = pnand %p2109_p10, %p2374_p8 }
  0x9a   : > { %p2118_p2 = por %p2117_p0, %p2116_p13 }
  0x9b   : > { %p2112_p12 = pneg %p2111_p11 }
  0x9d   : > { %p2119_p5 = pnand %p2118_p2, %p2112_p12 }
  0x9f   : > { %2122 = shalt.err (!%p2119_p5)
}
  0xa0   : > { %1827 = dma.hbm_to_vmem [thread:$0]  (!%p2358_p6), %s2733_s6, 16, %s296_s1, [#allocation13]  }
  0xa1   : > { %s1593_s22 = sadd.s32 4294967294, %s2247_s29   ;;  %s38_s13 = sadd.s32 1, %s2243_s28 }
  0xa2   : > { %p40_p8 = scmp.ge.s32.totalorder %s38_s13, 2  ;;  %s45_s14 = sadd.s32 1, %s2235_s26 }
  0xa3   : > { %p52_p7 = scmp.ne.s32.totalorder %s2235_s26, %s2231_s25  ;;  %p53_p9 = scmp.eq.s32.totalorder %s2247_s29, 0 }
  0xa4   : > { %s2766_s13 = smov (%p40_p8, %s38_s13), 0  ;;  %p58_p1 = scmp.ne.s32.totalorder %s2231_s25, %s2227_s24 }
  0xa5   : > { %p2494_p4 = por %p53_p9, %p52_p7  ;;  %s42_s17 = ssub.s32 %s2243_s28, %s2766_s13 }
  0xa6   : > { %s2749_s1 = sadd.s32 4294967295, %s2247_s29   ;;  %p43_p3 = scmp.eq.s32.totalorder %s42_s17, 0 }
  0xa7   : > { %p210_p6 = scmp.eq.s32.totalorder %s2749_s1, 1  ;;  %p2750_p10 = scmp.ne.s32.totalorder %s2742_s8, 0 }
  0xa8   : > { %p216_p13 = scmp.eq.s32.totalorder %s1593_s22, 1  ;;  %p1842_p2 = scmp.lt.s32.totalorder %s2247_s29, 2 }
  0xa9   : > { %p2506_p11 = por %p2750_p10, %p58_p1  ;;  %p2510_p12 = por %p210_p6, %p52_p7 }
  0xaa   : > { %s2515_s20 = scalar_select %p43_p3, %s2235_s26, %s45_s14  }
  0xab   : > { %s2752_s3 = scalar_select %p2510_p12, 1, 0 }
  0xac   : > { %p2517_p0 = por %p216_p13, %p58_p1  ;;  %s306_s23 = sand.u32 1, %s2235_s26  }
  0xad   : > { %s1603_s12 = sshll.u32 %s2243_s28, 7  ;;  %s1602_s15 = sshll.u32 %s306_s23, 3 }
  0xae   : > { %s2753_s30 = scalar_select %p2517_p0, 1, 0 }
  0xaf   : > { %s2527_s19 = scalar_lea.hbm %s2727_s0, %s1603_s12  ;;  %s310_s21 = scalar_lea.vmem [#allocation3], %s1602_s15 }
  0xb0   : > { %s317_s22 = sshll.u32 %s310_s21, 4  ;;  %p2531_p5 = pnand %p1842_p2, %p2494_p4  ;;  %s2535_s22 = int_to_ptr.vmem [resolvable:$true] %s317_s22 }
  0xb1   : > { %s307_s17 = scalar_lea.sflag [#allocation4], %s306_s23  ;;  %s2123_s1 = scalar_lea.hbm %s2527_s19, 128 }
  0xb2   : > { %p2124_p8 = scmp.ne.s32.totalorder %s2527_s19, %s2123_s1  ;;  %p2125_p7 = pneg %p2531_p5 }
  0xb3   : > { %s2128_s16 = scalar_lea.hbm %s2727_s0, 256  ;;  %p2129_p4 = scmp.lt.u32.totalorder %s2527_s19, %s2727_s0 }
  0xb4   : > { %p2126_p9 = pnand %p2125_p7, %p2124_p8  ;;  %p2130_p6 = scmp.lt.u32.totalorder %s2128_s16, %s2123_s1 }
  0xb5   : > { %p2132_p10 = scmp.lt.u32.totalorder %s2123_s1, %s2527_s19 }
  0xb6   : > { %p2127_p1 = pneg %p2126_p9  ;;  %p2131_p3 = por %p2130_p6, %p2129_p4 }
  0xb8   : > { %p2133_p13 = por %p2132_p10, %p2131_p3 }
  0xba   : > { %p2134_p2 = pnand %p2133_p13, %p2127_p1 }
  0xbc   : > { %2137 = shalt.err (!%p2134_p2)
}
  0xbd   : > { %s2138_s23 = scalar_lea.vmem %s2535_s22, 128  ;;  %s2257_s21 = smov [#allocation3]  }
  0xbe   : > { %p2139_p8 = scmp.ne.s32.totalorder %s2535_s22, %s2138_s23  ;;  %s2143_s12 = sshll.u32 %s2257_s21, 4  ;;  %s2144_s12 = int_to_ptr.vmem [resolvable:$false] %s2143_s12 }
  0xbf   : > { %s2145_s15 = scalar_lea.vmem %s2144_s12, 256  ;;  %p2146_p12 = scmp.lt.s32.totalorder %s2535_s22, %s2144_s12 }
  0xc0   : > { %p2141_p9 = pnand %p2139_p8, %p2125_p7  ;;  %p2147_p4 = scmp.lt.s32.totalorder %s2145_s15, %s2138_s23 }
  0xc2   : > { %p2142_p0 = pneg %p2141_p9  ;;  %p2148_p6 = por %p2147_p4, %p2146_p12 }
  0xc4   : > { %p2149_p3 = pnand %p2148_p6, %p2142_p0 }
  0xc6   : > { %2152 = shalt.err (!%p2149_p3)
}
  0xc7   : > { %1831 = dma.hbm_to_vmem [thread:$0]  (!%p2531_p5), %s2527_s19, 128, %s2535_s22, %s307_s17  }
  0xc8   : > { %p2755_p1 = scmp.ne.s32.totalorder %s2743_s9, 0 }
  0xc9   : > { %s2565_s1 = sand.u32 (!%p2755_p1), 1, %s2231_s25  }
  0xca   : > { %326 = sbr.rel (%p2755_p1) target bundleno = 2067 (0x813), region = 48  ;;  %s1605_s16 = sshll.u32 (!%p2755_p1), %s2565_s1, 3 }
  0xcb   : > { %s329_s10 = scalar_lea.sflag (!%p2755_p1), [#allocation4], %s2565_s1  ;;  %s332_s11 = scalar_lea.vmem (!%p2755_p1), [#allocation3], %s1605_s16 }
  0xd1   : > { %2206 = dma.done.wait (%p2506_p11), %s329_s10, 128  }
  0xd2   : > { %2208 = vsyncadd (%p2506_p11), %s329_s10, 4294967168  ;;  %p2756_p12 = scmp.ne.s32.totalorder %s2742_s8, 0 }
  0xd4   : > { %2210 = dma.done.wait (%p2756_p12), [#allocation7], 32  }
  0xd5   : > { %2212 = vsyncadd (%p2756_p12), [#allocation7], 4294967264 }
  0xd6   : > { %2214 = dma.done.wait (%p2756_p12), [#allocation10], 528  }
  0xd7   : > { %2216 = vsyncadd (%p2756_p12), [#allocation10], 4294966768 }
  0xd8   : > { %2218 = dma.done.wait (%p2756_p12), [#allocation13], 528  }
  0xd9   : > { %2220 = vsyncadd (%p2756_p12), [#allocation13], 4294966768  ;;  %vm391_vm0 = vcmask 261120   ;;  %v2587_v0 = vld [vmem:[%s332_s11] sm:$0xff]  ;;  %v420_v2 = vld [vmem:[#allocation9] sm:$0xff]  ;;  %s2258_s9 = smov 96  }
  0xda   : > { %v392_v1 = vsel %vm391_vm0, %v2587_v0, 0.0  ;;  %v421_v3 = vld [vmem:[#allocation9 + $0x8] sm:$0xff]  ;;  %v422_v4 = vld [vmem:[#allocation9 + $0x10] sm:$0xff]  ;;  %v423_v6 = vld [vmem:[#allocation9 + $0x18] sm:$0xff]  ;;  %s2259_s8 = smov 64   ;;  %v2260_v17 = vmov 0.0|0.0  }
  0xdb   : > { %393 = vadd.xlane.f32.xlu0 %v392_v1  ;;  %v1917_v5 = vpack.i.bf16 %v421_v3, %v420_v2  ;;  %v1922_v7 = vpack.i.bf16 %v423_v6, %v422_v4  ;;  %v1758_v14 = vpack.c.bf16 %v421_v3, %v420_v2  ;;  %1757 = vmatprep.subr.bf16.mxu0 %v2260_v17  ;;  %vm2261_vm1 = vmmov 0   ;;  %v1615_v25 = vld [vmem:[#allocation11] ss:$0 sm:$0xff]  ;;  %v1613_v33 = vld [vmem:[#allocation6] ss:$0 sm:$0xff]  ;;  %s2263_s18 = smov 120  }
  0xdc   : > { %1763 = vmatprep.subr.bf16.mxu1 %v2260_v17  ;;  %v1761_v18 = vpack.c.bf16 %v423_v6, %v422_v4  ;;  %v2262_v19 = vmov 0.0   ;;  %v1614_v36 = vld [vmem:[#allocation8] ss:$0 sm:$0xff]  ;;  %vm678_vm2 = vcmask 64512   ;;  %s2264_s19 = smov 112   ;;  %s2265_s22 = smov 104  }
  0xdd   : > { %1918 = vrot.lane.b32.xlu1 %v1917_v5, %s2258_s9  ;;  %1759 = vmatpush3.bf16.msra.mxu0 %v1758_v14  ;;  %s2266_s14 = smov 8   ;;  %s2267_s17 = smov 16   ;;  %vm1010_vm3 = vcmask 130112   ;;  %vm1181_vm4 = vcmask 195712   ;;  %vm1352_vm5 = vcmask 261312  }
  0xde   : > { %1681 = vmatprep.mubr.msk.f32.mxu0 %vm2261_vm1, %v2262_v19  ;;  %1760 = vmatprep.subr.bf16.mxu0 %v2260_v17  ;;  %s2268_s23 = smov 24   ;;  %s1634_s21 = sshll.u32 %s2239_s27, 7 }
  0xdf   : > { %1692 = vmatprep.mubr.msk.f32.mxu1 %vm2261_vm1, %v2262_v19  ;;  %s386_s12 = scalar_lea.vmem [#allocation15], %s1605_s16  ;;  %s1442_s27 = scalar_lea.sflag [#allocation5], %s2565_s1 }
  0xe0   : > { %s1456_s15 = sshll.u32 %s386_s12, 4  ;;  %p2757_p0 = scmp.ne.s32.totalorder %s2752_s3, 0  ;;  %s2679_s15 = int_to_ptr.vmem [resolvable:$true] %s1456_s15 }
  0xe1   : > { %1923 = vrot.lane.b32.xlu1 %v1922_v7, %s2258_s9  ;;  %1762 = vmatpush3.bf16.msra.mxu0 %v1761_v18  ;;  %s2269_s16 = smov [#allocation15]  }
  0xe2   : > { %1769 = vmatprep.subr.bf16.mxu0 %v2260_v17 }
  0xe5   : > { %1928 = vrot.lane.b32.xlu1 %v1917_v5, %s2259_s8 }
  0xe9   : > { %1933 = vrot.lane.b32.xlu1 %v1922_v7, %s2259_s8 }
 0x14f   : > { %v1919_v13 = vpop.permute.xlu1 %1918 }
 0x150   : > { %v1921_v15 = vunpack.i.h.bf16 %v1919_v13  ;;  %v1920_v16 = vunpack.i.l.bf16 %v1919_v13 }
 0x152   : > { %v1764_v20 = vpack.c.bf16 %v1921_v15, %v1920_v16 }
 0x153   : > { %v1924_v21 = vpop.permute.xlu1 %1923 }
 0x154   : > { %v1926_v22 = vunpack.i.h.bf16 %v1924_v21  ;;  %v1925_v23 = vunpack.i.l.bf16 %v1924_v21  ;;  %1765 = vmatpush3.bf16.msra.mxu1 %v1764_v20 }
 0x155   : > { %1766 = vmatprep.subr.bf16.mxu1 %v2260_v17 }
 0x156   : > { %v1767_v24 = vpack.c.bf16 %v1926_v22, %v1925_v23 }
 0x157   : > { %v1929_v29 = vpop.permute.xlu1 %1928 }
 0x158   : > { %1768 = vmatpush3.bf16.msra.mxu1 %v1767_v24  ;;  %v1931_v31 = vunpack.i.h.bf16 %v1929_v29  ;;  %v1930_v32 = vunpack.i.l.bf16 %v1929_v29 }
 0x159   : > { %1706 = vmatprep.subr.mxu1 %v2262_v19 }
 0x15a   : > { %v1770_v38 = vpack.c.bf16 %v1931_v31, %v1930_v32 }
 0x15b   : > { %v1934_v34 = vpop.permute.xlu1 %1933 }
 0x15c   : > { %v1936_v39 = vunpack.i.h.bf16 %v1934_v34  ;;  %v1935_v40 = vunpack.i.l.bf16 %v1934_v34 }
 0x15e   : > { %v1773_v42 = vpack.c.bf16 %v1936_v39, %v1935_v40 }
 0x168   : > { %v394_v8 = vpop.xlane.xlu0 %393 }
 0x169   : > { %v396_v9 = vmul.f32 0.03125, %v394_v8 }
 0x16b   : > { %v397_v10 = vsub.f32 %v2587_v0, %v396_v9 }
 0x16d   : > { %v398_v11 = vmul.f32 %v397_v10, %v397_v10 }
 0x16f   : > { %v399_v12 = vsel %vm391_vm0, %v398_v11, 0.0 }
 0x170   : > { %400 = vadd.xlane.f32.xlu0 %v399_v12 }
 0x186   : > { %520 = vrot.lane.b32.xlu0 %v1615_v25, %s2258_s9  ;;  %s2677_s9 = scalar_lea.hbm %s2734_s7, %s1634_s21 }
 0x18a   : > { %605 = vrot.lane.b32.xlu0 %v1615_v25, %s2259_s8  ;;  %s2153_s8 = scalar_lea.vmem %s2679_s15, 128 }
 0x18b   : > { %p2154_p11 = scmp.ne.s32.totalorder %s2679_s15, %s2153_s8 }
 0x18d   : > { %p2155_p5 = pnand %p2154_p11, %p2757_p0 }
 0x18f   : > { %p2156_p7 = pneg %p2155_p5 }
 0x1fd   : > { %v401_v26 = vpop.xlane.xlu0 %400 }
 0x1fe   : > { %v402_v27 = vmul.f32 0.03125, %v401_v26 }
 0x200   : > { %v403_v28 = vadd.f32 1e-05, %v402_v27 }
 0x201   : > { %v521_v43 = vpop.permute.xlu0 %520 }
 0x202   : > { %1937 = vrsqrt.f32 %v403_v28 }
 0x205   : > { %v606_v51 = vpop.permute.xlu0 %605 }
 0x20c   : > { %v1938_v30 = vpop.eup %1937 }
 0x20d   : > { %v405_v35 = vmul.f32 %v1938_v30, %v397_v10 }
 0x20f   : > { %v412_v37 = vmul.f32 %v1613_v33, %v405_v35 }
 0x211   : > { %v419_v41 = vadd.f32 %v1614_v36, %v412_v37 }
 0x213   : > { %1682 = vmatmul.mubr.msk.f32.vlgmr.msra.gmra.mrb[0].mxu0 %vm391_vm0, %v419_v41  ;;  %1693 = vmatmul.mubr.msk.f32.vlgmr.msra.gmra.mrb[0].mxu1 %vm391_vm0, %v419_v41 }
 0x214   : > { %1771 = vmatpush3.bf16.msra.mxu0 %v1770_v38  ;;  %1703 = vmatprep.mubr.msk.f32.mxu0 %vm2261_vm1, %v2262_v19 }
 0x215   : > { %1772 = vmatprep.subr.bf16.mxu0 %v2260_v17  ;;  %1708 = vmatprep.mubr.msk.f32.mxu1 %vm2261_vm1, %v2262_v19 }
 0x218   : > { %1774 = vmatpush3.bf16.msra.mxu0 %v1773_v42 }
 0x219   : > { %1726 = vmatprep.subr.mxu0 %v2262_v19 }
 0x21b   : > { %1704 = vmatmul.mubr.msk.f32.vlgmr.msra.gmra.mrb[2].mxu0 %vm391_vm0, %v419_v41 }
 0x21c   : > { %1728 = vmatprep.mubr.msk.f32.mxu0 %vm2261_vm1, %v2262_v19 }
 0x2e6   : > { %v499_v44 = vpop.f32.mrb[0].mxu0  ;;  %v589_v45 = vpop.f32.mrb[0].mxu1 }
 0x2e7   : > { %v500_v46 = vadd.f32 %v1615_v25, %v499_v44  ;;  %v590_v47 = vadd.f32 %v589_v45, %v521_v43  ;;  %v1683_v48 = vpop.f32.mrb[1].mxu0  ;;  %v1694_v49 = vpop.f32.mrb[1].mxu1  ;;  %v1355_v43 = vld [vmem:[#allocation12] sm:$0xff]  ;;  %v1356_v44 = vld [vmem:[#allocation12 + $0x8] sm:$0xff]  ;;  %v1357_v45 = vld [vmem:[#allocation12 + $0x10] sm:$0xff] }
 0x2e9   : > { %v503_v50 = vmul.f32 0.35355338, %v500_v46  ;;  %842 = vrot.lane.b32.xlu0 %v590_v47, %s2263_s18  ;;  %1707 = vmatpush3.xpose.msk.msra.mxu1 %vm678_vm2, %v590_v47  ;;  %v1358_v46 = vld [vmem:[#allocation12 + $0x18] sm:$0xff] }
 0x2ea   : > { %1711 = vmatprep.subr.mxu1 %v2262_v19  ;;  %v1779_v49 = vpack.c.bf16 %v1358_v46, %v1357_v45 }
 0x2ec   : > { %1709 = vmatmul.mubr.msk.f32.vlgmr.msra.gmra.mrb[2].mxu1 %vm678_vm2, %v503_v50 }
 0x2ed   : > { %840 = vrot.lane.b32.xlu0 %v503_v50, %s2263_s18  ;;  %1713 = vmatprep.mubr.msk.f32.mxu1 %vm2261_vm1, %v2262_v19 }
 0x2ee   : > { %v674_v52 = vpop.f32.mrb[2].mxu0 }
 0x2ef   : > { %v675_v53 = vadd.f32 %v674_v52, %v606_v51  ;;  %v1705_v54 = vpop.f32.mrb[3].mxu0 }
 0x2f1   : > { %1712 = vmatpush3.msra.mxu1 %v675_v53  ;;  %1014 = vrot.lane.b32.xlu0 %v590_v47, %s2264_s19 }
 0x2f2   : > { %1716 = vmatprep.subr.mxu1 %v2262_v19 }
 0x2f5   : > { %1012 = vrot.lane.b32.xlu0 %v503_v50, %s2264_s19 }
 0x2f9   : > { %1185 = vrot.lane.b32.xlu0 %v590_v47, %s2265_s22 }
 0x35b   : > { %v843_v55 = vpop.permute.xlu0 %842 }
 0x35f   : > { %v841_v56 = vpop.permute.xlu0 %840 }
 0x363   : > { %v1015_v57 = vpop.permute.xlu0 %1014 }
 0x364   : > { %1727 = vmatpush3.xpose.msk.msra.mxu0 %vm678_vm2, %v1015_v57 }
 0x365   : > { %1736 = vmatprep.subr.mxu0 %v2262_v19 }
 0x367   : > { %v1013_v58 = vpop.permute.xlu0 %1012 }
 0x368   : > { %1729 = vmatmul.mubr.msk.f32.vlgmr.msra.gmra.mrb[4].mxu0 %vm678_vm2, %v1013_v58 }
 0x369   : > { %1738 = vmatprep.mubr.msk.f32.mxu0 %vm2261_vm1, %v2262_v19 }
 0x36b   : > { %v1186_v59 = vpop.permute.xlu0 %1185 }
 0x36c   : > { %1737 = vmatpush3.xpose.msk.msra.mxu0 %vm678_vm2, %v1186_v59 }
 0x36d   : > { %1775 = vmatprep.subr.bf16.mxu0 %v2260_v17 }
 0x3bf   : > { %v751_v60 = vpop.f32.mrb[2].mxu1 }
 0x3c0   : > { %v1710_v61 = vpop.f32.mrb[3].mxu1  ;;  %v755_v62 = vsel %vm678_vm2, %v751_v60, -inf }
 0x3c1   : > { %756 = vmax.xlane.f32.xlu1 %v755_v62 }
 0x3d2   : > { %1183 = vrot.lane.b32.xlu1 %v503_v50, %s2265_s22 }
 0x43b   : > { %v1086_v63 = vpop.f32.mrb[4].mxu0 }
 0x43c   : > { %v1730_v1 = vpop.f32.mrb[5].mxu0  ;;  %v1090_v2 = vsel %vm678_vm2, %v1086_v63, -inf }
 0x43d   : > { %1091 = vmax.xlane.f32.xlu1 %v1090_v2 }
 0x44e   : > { %v757_v3 = vpop.xlane.xlu1 %756  ;;  %1099 = vrot.lane.b32.xlu1 %v675_v53, %s2264_s19 }
 0x44f   : > { %v758_v4 = vsub.f32 %v751_v60, %v757_v3 }
 0x451   : > { %v759_v5 = vmul.f32 1.442695, %v758_v4 }
 0x452   : > { %v1184_v6 = vpop.permute.xlu1 %1183 }
 0x453   : > { %1939 = vpow2.f32 %v759_v5  ;;  %1739 = vmatmul.mubr.msk.f32.vlgmr.msra.gmra.mrb[6].mxu0 %vm678_vm2, %v1184_v6 }
 0x454   : > { %1754 = vmatprep.mubr.msk.f32.mxu0 %vm2261_vm1, %v2262_v19 }
 0x45d   : > { %v1940_v7 = vpop.eup %1939 }
 0x45e   : > { %1714 = vmatmul.mubr.msk.f32.vlgmr.msra.gmra.mrb[4].mxu1 %vm678_vm2, %v1940_v7  ;;  %v761_v36 = vsel %vm678_vm2, %v1940_v7, 0.0 }
 0x45f   : > { %1717 = vmatpush3.xpose.msk.msra.mxu1 %vm678_vm2, %v843_v55  ;;  %1718 = vmatprep.mubr.msk.f32.mxu1 %vm2261_vm1, %v2262_v19 }
 0x460   : > { %1721 = vmatprep.subr.mxu1 %v2262_v19 }
 0x462   : > { %1719 = vmatmul.mubr.msk.f32.vlgmr.msra.gmra.mrb[6].mxu1 %vm678_vm2, %v841_v56 }
 0x463   : > { %1723 = vmatprep.mubr.msk.f32.mxu1 %vm2261_vm1, %v2262_v19 }
 0x4ca   : > { %v1092_v8 = vpop.xlane.xlu1 %1091 }
 0x4cb   : > { %v1093_v9 = vsub.f32 %v1086_v63, %v1092_v8  ;;  %v1631_v63 = vld [vmem:[#allocation14] ss:$0 sm:$0xff] }
 0x4cd   : > { %v1094_v10 = vmul.f32 1.442695, %v1093_v9 }
 0x4ce   : > { %v1100_v31 = vpop.permute.xlu1 %1099 }
 0x4cf   : > { %1941 = vpow2.f32 %v1094_v10 }
 0x4d9   : > { %v1942_v11 = vpop.eup %1941 }
 0x4da   : > { %v1096_v12 = vsel %vm678_vm2, %v1942_v11, 0.0 }
 0x4db   : > { %1097 = vadd.xlane.f32.xlu1 %v1096_v12 }
 0x526   : > { %v1257_v13 = vpop.f32.mrb[6].mxu0 }
 0x527   : > { %v1740_v14 = vpop.f32.mrb[7].mxu0  ;;  %v1261_v15 = vsel %vm678_vm2, %v1257_v13, -inf }
 0x528   : > { %1262 = vmax.xlane.f32.xlu0 %v1261_v15 }
 0x531   : > { %v833_v16 = vpop.f32.mrb[4].mxu1 }
 0x532   : > { %v1715_v18 = vpop.f32.mrb[5].mxu1 }
 0x535   : > { %v914_v20 = vpop.f32.mrb[6].mxu1 }
 0x536   : > { %v1720_v21 = vpop.f32.mrb[7].mxu1  ;;  %v918_v22 = vsel %vm678_vm2, %v914_v20, -inf }
 0x537   : > { %919 = vmax.xlane.f32.xlu0 %v918_v22 }
 0x54d   : > { %928 = vrot.lane.b32.xlu0 %v675_v53, %s2263_s18  ;;  %s2157_s18 = sshll.u32 %s2269_s16, 4  ;;  %s2158_s18 = int_to_ptr.vmem [resolvable:$false] %s2157_s18 }
 0x54e   : > { %s2159_s19 = scalar_lea.vmem %s2158_s18, 256  ;;  %p2160_p10 = scmp.lt.s32.totalorder %s2679_s15, %s2158_s18 }
 0x54f   : > { %p2161_p13 = scmp.lt.s32.totalorder %s2159_s19, %s2153_s8 }
 0x551   : > { %1270 = vrot.lane.b32.xlu0 %v675_v53, %s2265_s22  ;;  %p2162_p2 = por %p2161_p13, %p2160_p10 }
 0x553   : > { %p2163_p8 = pnand %p2162_p2, %p2156_p7 }
 0x568   : > { %v1098_v42 = vpop.xlane.xlu1 %1097 }
 0x5b5   : > { %v1263_v23 = vpop.xlane.xlu0 %1262 }
 0x5b6   : > { %v1264_v24 = vsub.f32 %v1257_v13, %v1263_v23 }
 0x5b8   : > { %v1265_v27 = vmul.f32 1.442695, %v1264_v24 }
 0x5c4   : > { %v920_v25 = vpop.xlane.xlu0 %919 }
 0x5c5   : > { %v921_v26 = vsub.f32 %v914_v20, %v920_v25 }
 0x5c7   : > { %v922_v28 = vmul.f32 1.442695, %v921_v26 }
 0x5c8   : > { %v929_v29 = vpop.permute.xlu0 %928 }
 0x5c9   : > { %1943 = vpow2.f32 %v922_v28  ;;  %1722 = vmatpush3.msra.mxu1 %v929_v29 }
 0x5ca   : > { %1731 = vmatprep.subr.mxu1 %v2262_v19  ;;  %1945 = vpow2.f32 %v1265_v27 }
 0x5cc   : > { %v1271_v34 = vpop.permute.xlu0 %1270 }
 0x5d3   : > { %v1944_v30 = vpop.eup %1943 }
 0x5d4   : > { %1724 = vmatmul.mubr.msk.f32.vlgmr.msra.gmra.mrb[8].mxu1 %vm678_vm2, %v1944_v30  ;;  %v924_v32 = vsel %vm678_vm2, %v1944_v30, 0.0  ;;  %v1946_v33 = vpop.eup %1945 }
 0x5d5   : > { %1732 = vmatpush3.msra.mxu1 %v1100_v31  ;;  %925 = vadd.xlane.f32.xlu0 %v924_v32  ;;  %v1267_v35 = vsel %vm678_vm2, %v1946_v33, 0.0 }
 0x5d6   : > { %1733 = vmatprep.mubr.msk.f32.mxu1 %vm2261_vm1, %v2262_v19  ;;  %1741 = vmatprep.subr.mxu1 %v2262_v19 }
 0x5d8   : > { %1734 = vmatmul.mubr.msk.f32.vlgmr.msra.gmra.mrb[10].mxu1 %vm678_vm2, %v1942_v11 }
 0x5d9   : > { %1742 = vmatpush3.msra.mxu1 %v1271_v34  ;;  %1268 = vadd.xlane.f32.xlu0 %v1267_v35 }
 0x5da   : > { %1743 = vmatprep.mubr.msk.f32.mxu1 %vm2261_vm1, %v2262_v19  ;;  %v1776_v19 = vpack.c.bf16 %v1356_v44, %v1355_v43 }
 0x5dc   : > { %1744 = vmatmul.mubr.msk.f32.vlgmr.msra.gmra.mrb[12].mxu1 %vm678_vm2, %v1946_v33  ;;  %1777 = vmatpush3.bf16.msra.mxu0 %v1776_v19 }
 0x5dd   : > { %762 = vadd.xlane.f32.xlu0 %v761_v36  ;;  %1778 = vmatprep.subr.bf16.mxu0 %v2260_v17 }
 0x5e0   : > { %1780 = vmatpush3.bf16.msra.mxu0 %v1779_v49 }
 0x662   : > { %v926_v37 = vpop.xlane.xlu0 %925 }
 0x666   : > { %v1269_v38 = vpop.xlane.xlu0 %1268 }
 0x66a   : > { %v763_v39 = vpop.xlane.xlu0 %762 }
 0x66b   : > { %1947 = vrcp.f32 %v763_v39 }
 0x66c   : > { %1949 = vrcp.f32 %v926_v37 }
 0x66d   : > { %1951 = vrcp.f32 %v1098_v42 }
 0x66e   : > { %1953 = vrcp.f32 %v1269_v38 }
 0x675   : > { %v1948_v40 = vpop.eup %1947 }
 0x676   : > { %v838_v41 = vmul.f32 %v1948_v40, %v833_v16  ;;  %v1950_v47 = vpop.eup %1949 }
 0x677   : > { %v1952_v52 = vpop.eup %1951 }
 0x678   : > { %839 = vst.msk [vmem:[#allocation2] sm:$0xff] %vm678_vm2, %v838_v41  ;;  %v1954_v56 = vpop.eup %1953 }
 0x6a7   : > { %v1000_v48 = vpop.f32.mrb[8].mxu1 }
 0x6a8   : > { %v1005_v50 = vmul.f32 %v1950_v47, %v1000_v48  ;;  %v1725_v51 = vpop.f32.mrb[9].mxu1 }
 0x6aa   : > { %1007 = vrot.lane.b32.xlu0 %v1005_v50, %s2266_s14 }
 0x6ab   : > { %v1171_v53 = vpop.f32.mrb[10].mxu1 }
 0x6ac   : > { %v1176_v54 = vmul.f32 %v1952_v52, %v1171_v53  ;;  %v1735_v55 = vpop.f32.mrb[11].mxu1 }
 0x6ae   : > { %1178 = vrot.lane.b32.xlu1 %v1176_v54, %s2267_s17 }
 0x6af   : > { %v1342_v57 = vpop.f32.mrb[12].mxu1 }
 0x6b0   : > { %v1347_v58 = vmul.f32 %v1954_v56, %v1342_v57  ;;  %v1745_v59 = vpop.f32.mrb[13].mxu1 }
 0x6b2   : > { %1349 = vrot.lane.b32.xlu1 %v1347_v58, %s2268_s23 }
 0x71c   : > { %v1008_v60 = vpop.permute.xlu0 %1007 }
 0x71d   : > { %1011 = vst.msk [vmem:[#allocation2] sm:$0xff] %vm1010_vm3, %v1008_v60 }
 0x720   : > { %v1179_v17 = vpop.permute.xlu1 %1178 }
 0x721   : > { %1182 = vst.msk [vmem:[#allocation2] sm:$0xff] %vm1181_vm4, %v1179_v17 }
 0x724   : > { %v1350_v61 = vpop.permute.xlu1 %1349 }
 0x725   : > { %1353 = vst.msk [vmem:[#allocation2] sm:$0xff] %vm1352_vm5, %v1350_v61 }
 0x72c   : > { %v1354_v62 = vld [vmem:[#allocation2] sm:$0xff] }
 0x72d   : > { %1755 = vmatmul.mubr.msk.f32.vlgmr.msra.gmra.mrb[8].mxu0 %vm391_vm0, %v1354_v62 }
 0x800   : > { %v1435_v1 = vpop.f32.mrb[8].mxu0 }
 0x801   : > { %v1436_v2 = vadd.f32 %v1631_v63, %v1435_v1  ;;  %v1756_v3 = vpop.f32.mrb[9].mxu0 }
 0x803   : > { %v1439_v4 = vadd.f32 %v1436_v2, %v2587_v0 }
 0x805   : > { %1440 = vst.msk [vmem:[%s386_s12] sm:$0xff] %vm391_vm0, %v1439_v4 }
 0x806   : > { %2166 = shalt.err (!%p2163_p8)
}
 0x807   : > { %s2167_s1 = scalar_lea.hbm %s2677_s9, 128  ;;  %s2171_s17 = scalar_lea.hbm %s2734_s7, 256 }
 0x808   : > { %p2168_p9 = scmp.ne.s32.totalorder %s2677_s9, %s2167_s1  ;;  %p2172_p3 = scmp.lt.u32.totalorder %s2677_s9, %s2734_s7 }
 0x809   : > { %p2173_p1 = scmp.lt.u32.totalorder %s2171_s17, %s2167_s1  ;;  %p2175_p11 = scmp.lt.u32.totalorder %s2167_s1, %s2677_s9 }
 0x80a   : > { %p2169_p4 = pnand %p2168_p9, %p2757_p0 }
 0x80b   : > { %p2174_p12 = por %p2173_p1, %p2172_p3 }
 0x80c   : > { %p2170_p6 = pneg %p2169_p4 }
 0x80d   : > { %p2176_p5 = por %p2175_p11, %p2174_p12 }
 0x80f   : > { %p2177_p7 = pnand %p2176_p5, %p2170_p6 }
 0x811   : > { %2180 = shalt.err (!%p2177_p7)
}
 0x812   : > { %1807 = dma.vmem_to_hbm [thread:$0]  (%p2757_p0), %s2679_s15, 128, %s2677_s9, %s1442_s27  }
 0x813 PF: > { %s1468_s12 = sand.u32 1, %s2227_s24   ;;  %p2758_p10 = scmp.ne.s32.totalorder %s2753_s30, 0 }
 0x814   : > { %p2759_p13 = scmp.ge.s32.totalorder %s2247_s29, 2  ;;  %s1469_s10 = scalar_lea.sflag [#allocation5], %s1468_s12 }
 0x816   : > { %p1833_p2 = pnand %p2759_p13, %p2758_p10 }
 0x818   : > { %2222 = dma.done.wait (!%p1833_p2), %s1469_s10, 128  }
 0x819   : > { %2224 = vsyncadd (!%p1833_p2), %s1469_s10, 4294967168  ;;  %s26_s29 = sadd.s32 1, %s2247_s29   ;;  %s2760_s24 = smov %s2231_s25 }
 0x81a   : > { %p23_p8 = scmp.ge.s32.totalorder %s26_s29, 4   ;;  %s2761_s25 = smov %s2235_s26 }
 0x81b   : > { %s2762_s26 = smov %s2515_s20  ;;  %s2763_s27 = smov %s2243_s28 }
 0x81c   : > { %s2764_s28 = smov %s2766_s13  ;;  %25 = sbr.rel (!%p23_p8) target bundleno = 12 (0xc), region = 117 }
 0x823   :  { %1474 = vsyncpa [#allocation4], 1 }
 0x824   :  { %1476 = vsyncpa [#allocation4 + $0x1], 1 }
 0x825   :  { %1477 = vsyncpa [#allocation7], 1 }
 0x826   :  { %1478 = vsyncpa [#allocation10], 1 }
 0x827   :  { %1479 = vsyncpa [#allocation13], 1 }
 0x828   :  { %1480 = vsyncpa [#allocation5], 1 }
 0x829   :  { %1482 = vsyncpa [#allocation5 + $0x1], 1 }

</bundles_post_ra>
